<compile_context>
chip_gen: v6e
topology: v6e:2x2x1
jax: 0.10.0
libtpu: 0.0.40
codegen_flags: <defaults>
</compile_context>

<pallas_src>
import functools

import numpy as np

import jax
import jax.numpy as jnp
from jax.experimental import pallas as pl
from jax.experimental.pallas import tpu as pltpu


def _round_up(x, m):
    return (x + m - 1) // m * m


def _pick_tile(M, cap):
    """Rows per grid step: multiple of 16 (bf16 sublane packing), capped at `cap`,
    and chosen so the 'parallel' grid axis has >=2 steps when M is large enough
    (engages both TensorCores on v7x)."""
    if M <= 32:
        return _round_up(max(M, 1), 16)
    return max(16, min(cap, _round_up((M + 1) // 2, 16)))


# ----------------------------------------------------------------------------
# Pallas kernels
# ----------------------------------------------------------------------------
def _mm_bias_act_kernel(x_ref, w_ref, b_ref, o_ref, *, act):
    """y = act(x @ w + b); BN scale pre-folded into w, BN shift into b."""
    z = jnp.dot(x_ref[...], w_ref[...], preferred_element_type=jnp.float32)
    z = z + b_ref[...]
    if act == "relu":
        z = jnp.maximum(z, 0.0)
    elif act == "tanh":
        z = jnp.tanh(z)
    o_ref[...] = z.astype(o_ref.dtype)


def _mm_bias_relu_pool_kernel(x_ref, w_ref, b_ref, o_ref):
    """Conv + BN + ReLU + 2x2 MaxPool fused.

    x_ref holds the im2col patches of the 4 pool-window phases: (4, tile_m, K).
    All 4 phase slabs are stacked along M and pushed through ONE MXU matmul
    (amortizes pipeline fill, keeps the vmatmul slot fed), then reduced with an
    elementwise max.  max_p(relu(z_p + b)) == relu(max_p(z_p) + b) (shared bias).
    """
    P, tm, _ = x_ref.shape
    x = jnp.concatenate([x_ref[p] for p in range(P)], axis=0)        # (P*tm, K)
    z = jnp.dot(x, w_ref[...], preferred_element_type=jnp.float32)   # (P*tm, C)
    m = z[0:tm]
    for p in range(1, P):
        m = jnp.maximum(m, z[p * tm:(p + 1) * tm])
    o_ref[...] = jnp.maximum(m + b_ref[...], 0.0).astype(o_ref.dtype)


def _mm_relu_mm_tanh_kernel(x_ref, w1_ref, b1_ref, w2_ref, b2_ref, o_ref):
    """ConvT4+BN+ReLU and ConvT5+BN+Tanh fused: y = tanh(relu(x@w1+b1) @ w2 + b2).

    w2 is the block-diagonal per-phase ConvT5 matrix, so the 576-wide layer-4
    activation never round-trips through HBM and the 4-lane layer-5 output is gone.
    """
    z = jnp.dot(x_ref[...], w1_ref[...], preferred_element_type=jnp.float32)
    z = jnp.maximum(z + b1_ref[...], 0.0)
    z = jnp.dot(z.astype(w2_ref.dtype), w2_ref[...],
                preferred_element_type=jnp.float32)
    o_ref[...] = jnp.tanh(z + b2_ref[...]).astype(o_ref.dtype)


def _pallas_layer(x, consts, *, kernel, out_cols, out_dtype, tile_m):
    """Launch one fused layer kernel, tiled over M on a 'parallel' grid axis.

    x: (M, K) or (4, M, K) (pool-phase) patches; consts: whole-array 2-D operands
    (weights / biases) passed to every grid step.
    """
    pool = x.ndim == 3
    if pool:
        P, M, K = x.shape
    else:
        M, K = x.shape

    tm = _pick_tile(M, tile_m)
    Mp = _round_up(M, tm)
    if Mp != M:
        padw = ((0, 0), (0, Mp - M), (0, 0)) if pool else ((0, Mp - M), (0, 0))
        x = jnp.pad(x, padw)

    if pool:
        x_spec = pl.BlockSpec((P, tm, K), lambda i: (0, i, 0))
    else:
        x_spec = pl.BlockSpec((tm, K), lambda i: (i, 0))
    const_specs = [pl.BlockSpec(c.shape, lambda i: (0, 0)) for c in consts]

    out = pl.pallas_call(
        kernel,
        out_shape=jax.ShapeDtypeStruct((Mp, out_cols), out_dtype),
        grid=(Mp // tm,),
        in_specs=[x_spec] + const_specs,
        out_specs=pl.BlockSpec((tm, out_cols), lambda i: (i, 0)),
        compiler_params=pltpu.CompilerParams(
            dimension_semantics=("parallel",),
            vmem_limit_bytes=32 * 1024 * 1024,   # fits v7x's 64 MiB with headroom
        ),
    )(x, *consts)
    return out[:M] if Mp != M else out


# ----------------------------------------------------------------------------
# Static (numpy, trace-time) row-gather index builders + tiny JAX glue
# ----------------------------------------------------------------------------
def _gather_patches(x_rows, idx):
    """x_rows: (R, C); idx: int32 (..., T) into rows, sentinel R = zero row.
    Returns (..., T*C) patches (same dtype as x_rows)."""
    R, C = x_rows.shape
    xz = jnp.concatenate([x_rows, jnp.zeros((1, C), x_rows.dtype)], axis=0)
    g = jnp.take(xz, jnp.asarray(idx.reshape(-1)), axis=0)
    return g.reshape(idx.shape[:-1] + (idx.shape[-1] * C,))


def _enc_pool_patch_idx(N, H, W, k, stride, pad, Hp, Wp, pool_stride):
    """im2col indices fused with 2x2 max-pool ordering -> (4, N*Hp*Wp, k*k)."""
    dy = np.arange(2).reshape(2, 1, 1, 1, 1, 1)
    dx = np.arange(2).reshape(1, 2, 1, 1, 1, 1)
    hp = np.arange(Hp).reshape(1, 1, Hp, 1, 1, 1)
    wp = np.arange(Wp).reshape(1, 1, 1, Wp, 1, 1)
    ki = np.arange(k).reshape(1, 1, 1, 1, k, 1)
    kj = np.arange(k).reshape(1, 1, 1, 1, 1, k)
    hi = (hp * pool_stride + dy) * stride + ki - pad
    wi = (wp * pool_stride + dx) * stride + kj - pad
    valid = (hi >= 0) & (hi < H) & (wi >= 0) & (wi < W)
    flat = np.where(valid, hi * W + wi, -1)                     # (2,2,Hp,Wp,k,k)
    flat = flat.reshape(4, 1, Hp * Wp, k * k)
    base = (np.arange(N) * H * W).reshape(1, N, 1, 1)
    sent = N * H * W
    out = np.where(flat < 0, sent, flat + base)                 # (4,N,Hp*Wp,k*k)
    return out.reshape(4, N * Hp * Wp, k * k).astype(np.int32)


def _decT_patch_idx(N, H, W, D, U, V):
    """Stride-1 window (D x D) indices for the phase-decomposed ConvTranspose.
    Output phase-grid is (U, V); hi = u - (D-1) + th."""
    u = np.arange(U).reshape(U, 1, 1, 1)
    v = np.arange(V).reshape(1, V, 1, 1)
    th = np.arange(D).reshape(1, 1, D, 1)
    tw = np.arange(D).reshape(1, 1, 1, D)
    hi = u - (D - 1) + th
    wi = v - (D - 1) + tw
    valid = (hi >= 0) & (hi < H) & (wi >= 0) & (wi < W)
    flat = np.where(valid, hi * W + wi, -1)                     # (U,V,D,D)
    flat = flat.reshape(1, U * V, D * D)
    base = (np.arange(N) * H * W).reshape(N, 1, 1)
    sent = N * H * W
    out = np.where(flat < 0, sent, flat + base)
    return out.reshape(N * U * V, D * D).astype(np.int32)


def _pixel_shuffle_crop(y, N, U, V, s, C, pad, Ho, Wo):
    """(N*U*V, s*s*C) phase matmul output -> NHWC (N, Ho, Wo, C)."""
    y = y.reshape(N, U, V, s, s, C)
    y = jnp.transpose(y, (0, 1, 3, 2, 4, 5)).reshape(N, U * s, V * s, C)
    return y[:, pad:pad + Ho, pad:pad + Wo, :]


# ----------------------------------------------------------------------------
# Weight / BatchNorm folding (eval-mode BN)
# ----------------------------------------------------------------------------
def _fold_bn(conv_bias, gamma, beta, mean, var, eps=1e-5):
    scale = gamma / jnp.sqrt(var + eps)
    bias = (conv_bias - mean) * scale + beta
    return scale.astype(jnp.float32), bias.astype(jnp.float32)


def _enc_weight_matrix(w_oihw, scale):
    """Conv2d weight (C_out,C_in,kh,kw) -> (kh*kw*C_in, C_out) with BN scale folded."""
    C_out, C_in, kh, kw = w_oihw.shape
    wm = jnp.transpose(w_oihw, (2, 3, 1, 0)).reshape(kh * kw * C_in, C_out)
    return (wm * scale[None, :]).astype(jnp.bfloat16)


def _decT_weight_matrix(w_iohw, scale, stride):
    """ConvTranspose2d weight (C_in,C_out,kh,kw) -> phase-decomposed matrix
    (D*D*C_in, s*s*C_out), D = ceil(k/s), with BN scale folded (no dilation zeros)."""
    C_in, C_out, kh, kw = w_iohw.shape
    D = -(-kh // stride)
    w = w_iohw * scale[None, :, None, None]
    w = jnp.pad(w, ((0, 0), (0, 0), (0, D * stride - kh), (0, D * stride - kw)))
    w = w.reshape(C_in, C_out, D, stride, D, stride)            # i = di*s + r
    w = jnp.flip(w, axis=(2, 4))                                # t = D-1-di
    w = jnp.transpose(w, (2, 4, 0, 3, 5, 1))                    # (th,tw,cin,rh,rw,cout)
    return w.reshape(D * D * C_in, stride * stride * C_out).astype(jnp.bfloat16)


# ----------------------------------------------------------------------------
# Parameter construction (deterministic) and forward pass
# ----------------------------------------------------------------------------
def init_params(key):
    def nrm(k, shape, s=0.1):
        return s * jax.random.normal(k, shape, dtype=jnp.float32)

    def bn(k, c):
        k1, k2, k3, k4 = jax.random.split(k, 4)
        gamma = 1.0 + 0.1 * jax.random.normal(k1, (c,), dtype=jnp.float32)
        beta = nrm(k2, (c,))
        mean = nrm(k3, (c,))
        var = 0.5 + jax.random.uniform(k4, (c,), dtype=jnp.float32)
        return gamma, beta, mean, var

    ks = jax.random.split(key, 15)
    p = {}
    # encoder (Conv2d weights: (C_out, C_in, kh, kw))
    p["w1"] = nrm(ks[0], (16, 1, 3, 3));   p["b1"] = nrm(ks[1], (16,));  p["bn1"] = bn(ks[2], 16)
    p["w2"] = nrm(ks[3], (64, 16, 3, 3));  p["b2"] = nrm(ks[4], (64,));  p["bn2"] = bn(ks[5], 64)
    # decoder (ConvTranspose2d weights: (C_in, C_out, kh, kw))
    p["w3"] = nrm(ks[6], (64, 128, 3, 3)); p["b3"] = nrm(ks[7], (128,)); p["bn3"] = bn(ks[8], 128)
    p["w4"] = nrm(ks[9], (128, 64, 5, 5)); p["b4"] = nrm(ks[10], (64,)); p["bn4"] = bn(ks[11], 64)
    p["w5"] = nrm(ks[12], (64, 1, 2, 2));  p["b5"] = nrm(ks[13], (1,));  p["bn5"] = bn(ks[14], 1)
    return p


def autoencoder_forward(x_nchw, p):
    bf16, f32 = jnp.bfloat16, jnp.float32
    N, C_in, H, W = x_nchw.shape

    # spatial sizes along the network
    H1 = (H + 2 - 3) // 3 + 1;   W1 = (W + 2 - 3) // 3 + 1       # conv1 k3 s3 p1
    H1p = (H1 - 2) // 2 + 1;     W1p = (W1 - 2) // 2 + 1          # maxpool 2 s2
    H2 = (H1p + 2 - 3) // 2 + 1; W2 = (W1p + 2 - 3) // 2 + 1      # conv2 k3 s2 p1
    H2p = H2 - 1;                W2p = W2 - 1                      # maxpool 2 s1
    H3 = (H2p - 1) * 2 + 3;      W3 = (W2p - 1) * 2 + 3            # convT k3 s2 p0
    H4 = (H3 - 1) * 3 + 3;       W4 = (W3 - 1) * 3 + 3             # convT k5 s3 p1
    H5 = (H4 - 1) * 2;           W5 = (W4 - 1) * 2                 # convT k2 s2 p1

    # ---- fold eval-mode BatchNorm into weights / biases ----
    s1, b1 = _fold_bn(p["b1"], *p["bn1"]); s2, b2 = _fold_bn(p["b2"], *p["bn2"])
    s3, b3 = _fold_bn(p["b3"], *p["bn3"]); s4, b4 = _fold_bn(p["b4"], *p["bn4"])
    s5, b5 = _fold_bn(p["b5"], *p["bn5"])
    w1 = _enc_weight_matrix(p["w1"], s1)                # (9, 16)
    w2 = _enc_weight_matrix(p["w2"], s2)                # (144, 64)
    w3 = _decT_weight_matrix(p["w3"], s3, 2)            # (256, 512)
    w4 = _decT_weight_matrix(p["w4"], s4, 3)            # (512, 576)
    w5 = _decT_weight_matrix(p["w5"], s5, 2)            # (64, 4)  D=1 -> per-row matmul
    # conv5 fused into the layer-4 kernel: block-diagonal weight, one 64->4 block
    # per conv4 output phase (9 phases) -> (576, 36)
    w5_blk = jnp.kron(jnp.eye(9, dtype=f32), w5.astype(f32)).astype(bf16)
    b1 = b1.reshape(1, -1);            b2 = b2.reshape(1, -1)
    b3 = jnp.tile(b3, 4).reshape(1, -1)
    b4 = jnp.tile(b4, 9).reshape(1, -1)
    b5 = jnp.tile(b5, 36).reshape(1, -1)

    relu_kernel = functools.partial(_mm_bias_act_kernel, act="relu")

    # ---- encoder: conv + BN + ReLU + maxpool fused per pallas_call ----
    x = jnp.transpose(x_nchw, (0, 2, 3, 1)).reshape(N * H * W, C_in).astype(bf16)
    idx1 = _enc_pool_patch_idx(N, H, W, 3, 3, 1, H1p, W1p, 2)
    a1 = _pallas_layer(_gather_patches(x, idx1), [w1, b1],
                       kernel=_mm_bias_relu_pool_kernel, out_cols=16,
                       out_dtype=bf16, tile_m=1024)                  # (N*H1p*W1p, 16)

    idx2 = _enc_pool_patch_idx(N, H1p, W1p, 3, 2, 1, H2p, W2p, 1)
    a2 = _pallas_layer(_gather_patches(a1, idx2), [w2, b2],
                       kernel=_mm_bias_relu_pool_kernel, out_cols=64,
                       out_dtype=bf16, tile_m=512)                   # (N*H2p*W2p, 64)

    # ---- decoder: ConvTranspose via phase decomposition (no zero-dilation) ----
    U3, V3 = H2p + 1, W2p + 1                      # Hi - 1 + D, D = ceil(3/2) = 2
    idx3 = _decT_patch_idx(N, H2p, W2p, 2, U3, V3)
    y3 = _pallas_layer(_gather_patches(a2, idx3), [w3, b3],
                       kernel=relu_kernel, out_cols=512,
                       out_dtype=bf16, tile_m=512)                   # (N*U3*V3, 512)
    a3 = _pixel_shuffle_crop(y3, N, U3, V3, 2, 128, 0, H3, W3).reshape(N * H3 * W3, 128)

    # convT4+BN+ReLU and convT5+BN+Tanh in ONE kernel (convT5 has D=1: pure per-row
    # 64->4 matmul applied to each of the 9 convT4 output phases via w5_blk).
    U4, V4 = H3 + 1, W3 + 1                        # D = ceil(5/3) = 2
    idx4 = _decT_patch_idx(N, H3, W3, 2, U4, V4)
    y45 = _pallas_layer(_gather_patches(a3, idx4), [w4, b4, w5_blk, b5],
                        kernel=_mm_relu_mm_tanh_kernel, out_cols=36,
                        out_dtype=f32, tile_m=256)                   # (N*U4*V4, 36)

    # pixel-shuffle/crop of the convT4 phases, then of the convT5 phases (wrapper glue)
    y5 = _pixel_shuffle_crop(y45, N, U4, V4, 3, 4, 1, H4, W4).reshape(N * H4 * W4, 4)
    out = _pixel_shuffle_crop(y5, N, H4, W4, 2, 1, 1, H5, W5)        # (N, 28, 28, 1)
    return jnp.transpose(out, (0, 3, 1, 2))                          # NHWC -> NCHW


# ----------------------------------------------------------------------------
# Pure-JAX reference of the PyTorch module (eval-mode BN), for validation
# ----------------------------------------------------------------------------
def _reference_forward(x, p, eps=1e-5):
    def bn(h, stats):
        g, b, m, v = stats
        sc = (g / jnp.sqrt(v + eps)).reshape(1, -1, 1, 1)
        return (h - m.reshape(1, -1, 1, 1)) * sc + b.reshape(1, -1, 1, 1)

    def conv(h, w, b, stride, pad):
        y = jax.lax.conv_general_dilated(
            h, w, (stride, stride), [(pad, pad), (pad, pad)],
            dimension_numbers=("NCHW", "OIHW", "NCHW"))
        return y + b.reshape(1, -1, 1, 1)

    def convt(h, w, b, stride, pad):
        k = w.shape[-1]
        w_f = jnp.transpose(jnp.flip(w, (2, 3)), (1, 0, 2, 3))       # -> OIHW, flipped
        y = jax.lax.conv_general_dilated(
            h, w_f, (1, 1), [(k - 1 - pad, k - 1 - pad)] * 2,
            lhs_dilation=(stride, stride),
            dimension_numbers=("NCHW", "OIHW", "NCHW"))
        return y + b.reshape(1, -1, 1, 1)

    def maxpool(h, k, stride):
        return jax.lax.reduce_window(h, -jnp.inf, jax.lax.max,
                                     (1, 1, k, k), (1, 1, stride, stride), "VALID")

    h = maxpool(jax.nn.relu(bn(conv(x, p["w1"], p["b1"], 3, 1), p["bn1"])), 2, 2)
    h = maxpool(jax.nn.relu(bn(conv(h, p["w2"], p["b2"], 2, 1), p["bn2"])), 2, 1)
    h = jax.nn.relu(bn(convt(h, p["w3"], p["b3"], 2, 0), p["bn3"]))
    h = jax.nn.relu(bn(convt(h, p["w4"], p["b4"], 3, 1), p["bn4"]))
    return jnp.tanh(bn(convt(h, p["w5"], p["b5"], 2, 1), p["bn5"]))


if __name__ == "__main__":
    key = jax.random.PRNGKey(0)
    k_param, k_x = jax.random.split(key)
    params = init_params(k_param)

    # MNIST-shaped input: (batch=2, channels=1, 28, 28)
    x = jax.random.normal(k_x, (2, 1, 28, 28), dtype=jnp.float32)

    fwd = jax.jit(functools.partial(autoencoder_forward, p=params))
    out = fwd(x)
    jax.block_until_ready(out)

    assert out.shape == (2, 1, 28, 28), out.shape
    assert out.dtype == jnp.float32
    assert bool(jnp.all(jnp.isfinite(out)))

    # Validate against a pure-JAX f32 reference (bf16 folded weights/activations
    # => loose tolerance; a structural/indexing bug would show O(1) errors).
    ref = _reference_forward(x, params)
    max_err = float(jnp.max(jnp.abs(out - ref)))
    assert max_err < 0.25, f"mismatch vs reference: max abs err = {max_err}"

    print("KERNEL_OK")
</pallas_src>

<mosaic_0001>
module attributes {stable_mosaic.version = 11 : i64} {
  func.func @_mm_bias_relu_pool_kernel(%arg0: i32, %arg1: memref<4x32x9xbf16, #tpu.memory_space<vmem>>, %arg2: memref<9x16xbf16, #tpu.memory_space<vmem>>, %arg3: memref<1x16xf32, #tpu.memory_space<vmem>>, %arg4: memref<32x16xbf16, #tpu.memory_space<vmem>>) attributes {dimension_semantics = [#tpu.dimension_semantics<parallel>], iteration_bounds = array<i64: 2>, scalar_prefetch = 0 : i64, scratch_operands = 0 : i64, tpu.core_type = #tpu.core_type<tc>, window_params = [{transform_indices = @transform_0, window_bounds = array<i64: 4, 32, 9>}, {pipeline_mode = #tpu.pipeline_mode<synchronous>, transform_indices = @transform_1, window_bounds = array<i64: 9, 16>}, {pipeline_mode = #tpu.pipeline_mode<synchronous>, transform_indices = @transform_2, window_bounds = array<i64: 1, 16>}, {transform_indices = @transform_3, window_bounds = array<i64: 32, 16>}]} {
    %c0 = arith.constant 0 : index
    %c0_0 = arith.constant 0 : index
    %c0_1 = arith.constant 0 : index
    %0 = vector.load %arg1[%c0, %c0_0, %c0_1] : memref<4x32x9xbf16, #tpu.memory_space<vmem>>, vector<1x32x9xbf16>
    %1 = vector.shape_cast %0 : vector<1x32x9xbf16> to vector<32x9xbf16>
    %c1 = arith.constant 1 : index
    %c0_2 = arith.constant 0 : index
    %c0_3 = arith.constant 0 : index
    %2 = vector.load %arg1[%c1, %c0_2, %c0_3] : memref<4x32x9xbf16, #tpu.memory_space<vmem>>, vector<1x32x9xbf16>
    %3 = vector.shape_cast %2 : vector<1x32x9xbf16> to vector<32x9xbf16>
    %c2 = arith.constant 2 : index
    %c0_4 = arith.constant 0 : index
    %c0_5 = arith.constant 0 : index
    %4 = vector.load %arg1[%c2, %c0_4, %c0_5] : memref<4x32x9xbf16, #tpu.memory_space<vmem>>, vector<1x32x9xbf16>
    %5 = vector.shape_cast %4 : vector<1x32x9xbf16> to vector<32x9xbf16>
    %c3 = arith.constant 3 : index
    %c0_6 = arith.constant 0 : index
    %c0_7 = arith.constant 0 : index
    %6 = vector.load %arg1[%c3, %c0_6, %c0_7] : memref<4x32x9xbf16, #tpu.memory_space<vmem>>, vector<1x32x9xbf16>
    %7 = vector.shape_cast %6 : vector<1x32x9xbf16> to vector<32x9xbf16>
    %8 = tpu.concatenate %1, %3, %5, %7 in 0 : vector<32x9xbf16>, vector<32x9xbf16>, vector<32x9xbf16>, vector<32x9xbf16> -> vector<128x9xbf16>
    %c0_8 = arith.constant 0 : index
    %c0_9 = arith.constant 0 : index
    %9 = vector.load %arg2[%c0_8, %c0_9] : memref<9x16xbf16, #tpu.memory_space<vmem>>, vector<9x16xbf16>
    %cst = arith.constant dense<0.000000e+00> : vector<128x16xf32>
    %10 = tpu.matmul %8, %9, %cst {dimension_numbers = #tpu.dot_dimension_numbers<[1], [0], [0], [1], [0, 0, 1, 1], [], []>} : vector<128x9xbf16>, vector<9x16xbf16>, vector<128x16xf32> -> vector<128x16xf32>
    %11 = vector.extract_strided_slice %10 {offsets = [0, 0], sizes = [32, 16], strides = [1, 1]} : vector<128x16xf32> to vector<32x16xf32>
    %12 = vector.extract_strided_slice %10 {offsets = [32, 0], sizes = [32, 16], strides = [1, 1]} : vector<128x16xf32> to vector<32x16xf32>
    %13 = arith.maximumf %11, %12 : vector<32x16xf32>
    %14 = vector.extract_strided_slice %10 {offsets = [64, 0], sizes = [32, 16], strides = [1, 1]} : vector<128x16xf32> to vector<32x16xf32>
    %15 = arith.maximumf %13, %14 : vector<32x16xf32>
    %16 = vector.extract_strided_slice %10 {offsets = [96, 0], sizes = [32, 16], strides = [1, 1]} : vector<128x16xf32> to vector<32x16xf32>
    %17 = arith.maximumf %15, %16 : vector<32x16xf32>
    %c0_10 = arith.constant 0 : index
    %c0_11 = arith.constant 0 : index
    %18 = vector.load %arg3[%c0_10, %c0_11] : memref<1x16xf32, #tpu.memory_space<vmem>>, vector<1x16xf32>
    %19 = vector.broadcast %18 : vector<1x16xf32> to vector<32x16xf32>
    %20 = arith.addf %17, %19 : vector<32x16xf32>
    %cst_12 = arith.constant 0.000000e+00 : f32
    %21 = vector.broadcast %cst_12 : f32 to vector<32x16xf32>
    %22 = arith.maximumf %20, %21 : vector<32x16xf32>
    %23 = arith.truncf %22 : vector<32x16xf32> to vector<32x16xbf16>
    %c0_13 = arith.constant 0 : index
    %c0_14 = arith.constant 0 : index
    %24 = vector.load %arg4[%c0_13, %c0_14] : memref<32x16xbf16, #tpu.memory_space<vmem>>, vector<32x16xbf16>
    tpu.vector_store %arg4[%c0_13, %c0_14], %23 {strides = array<i32>} : memref<32x16xbf16, #tpu.memory_space<vmem>>, vector<32x16xbf16>,
    return
  }
  func.func @transform_0(%arg0: i32) -> (i32, i32, i32) {
    %c0_i32 = arith.constant 0 : i32
    %c0_i32_0 = arith.constant 0 : i32
    %c0_i32_1 = arith.constant 0 : i32
    return %c0_i32, %arg0, %c0_i32_0 : i32, i32, i32
  }
  func.func @transform_1(%arg0: i32) -> (i32, i32) {
    %c0_i32 = arith.constant 0 : i32
    %c0_i32_0 = arith.constant 0 : i32
    %c0_i32_1 = arith.constant 0 : i32
    return %c0_i32, %c0_i32_0 : i32, i32
  }
  func.func @transform_2(%arg0: i32) -> (i32, i32) {
    %c0_i32 = arith.constant 0 : i32
    %c0_i32_0 = arith.constant 0 : i32
    %c0_i32_1 = arith.constant 0 : i32
    return %c0_i32, %c0_i32_0 : i32, i32
  }
  func.func @transform_3(%arg0: i32) -> (i32, i32) {
    %c0_i32 = arith.constant 0 : i32
    %c0_i32_0 = arith.constant 0 : i32
    return %arg0, %c0_i32 : i32, i32
  }
}

module attributes {stable_mosaic.version = 11 : i64} {
  func.func @_mm_bias_relu_pool_kernel(%arg0: i32, %arg1: memref<4x16x144xbf16, #tpu.memory_space<vmem>>, %arg2: memref<144x64xbf16, #tpu.memory_space<vmem>>, %arg3: memref<1x64xf32, #tpu.memory_space<vmem>>, %arg4: memref<16x64xbf16, #tpu.memory_space<vmem>>) attributes {dimension_semantics = [#tpu.dimension_semantics<parallel>], iteration_bounds = array<i64: 1>, scalar_prefetch = 0 : i64, scratch_operands = 0 : i64, tpu.core_type = #tpu.core_type<tc>, window_params = [{transform_indices = @transform_0, window_bounds = array<i64: 4, 16, 144>}, {pipeline_mode = #tpu.pipeline_mode<synchronous>, transform_indices = @transform_1, window_bounds = array<i64: 144, 64>}, {pipeline_mode = #tpu.pipeline_mode<synchronous>, transform_indices = @transform_2, window_bounds = array<i64: 1, 64>}, {transform_indices = @transform_3, window_bounds = array<i64: 16, 64>}]} {
    %c0 = arith.constant 0 : index
    %c0_0 = arith.constant 0 : index
    %c0_1 = arith.constant 0 : index
    %0 = vector.load %arg1[%c0, %c0_0, %c0_1] : memref<4x16x144xbf16, #tpu.memory_space<vmem>>, vector<1x16x144xbf16>
    %1 = vector.shape_cast %0 : vector<1x16x144xbf16> to vector<16x144xbf16>
    %c1 = arith.constant 1 : index
    %c0_2 = arith.constant 0 : index
    %c0_3 = arith.constant 0 : index
    %2 = vector.load %arg1[%c1, %c0_2, %c0_3] : memref<4x16x144xbf16, #tpu.memory_space<vmem>>, vector<1x16x144xbf16>
    %3 = vector.shape_cast %2 : vector<1x16x144xbf16> to vector<16x144xbf16>
    %c2 = arith.constant 2 : index
    %c0_4 = arith.constant 0 : index
    %c0_5 = arith.constant 0 : index
    %4 = vector.load %arg1[%c2, %c0_4, %c0_5] : memref<4x16x144xbf16, #tpu.memory_space<vmem>>, vector<1x16x144xbf16>
    %5 = vector.shape_cast %4 : vector<1x16x144xbf16> to vector<16x144xbf16>
    %c3 = arith.constant 3 : index
    %c0_6 = arith.constant 0 : index
    %c0_7 = arith.constant 0 : index
    %6 = vector.load %arg1[%c3, %c0_6, %c0_7] : memref<4x16x144xbf16, #tpu.memory_space<vmem>>, vector<1x16x144xbf16>
    %7 = vector.shape_cast %6 : vector<1x16x144xbf16> to vector<16x144xbf16>
    %8 = tpu.concatenate %1, %3, %5, %7 in 0 : vector<16x144xbf16>, vector<16x144xbf16>, vector<16x144xbf16>, vector<16x144xbf16> -> vector<64x144xbf16>
    %c0_8 = arith.constant 0 : index
    %c0_9 = arith.constant 0 : index
    %9 = vector.load %arg2[%c0_8, %c0_9] : memref<144x64xbf16, #tpu.memory_space<vmem>>, vector<144x64xbf16>
    %cst = arith.constant dense<0.000000e+00> : vector<64x64xf32>
    %10 = tpu.matmul %8, %9, %cst {dimension_numbers = #tpu.dot_dimension_numbers<[1], [0], [0], [1], [0, 0, 1, 1], [], []>} : vector<64x144xbf16>, vector<144x64xbf16>, vector<64x64xf32> -> vector<64x64xf32>
    %11 = vector.extract_strided_slice %10 {offsets = [0, 0], sizes = [16, 64], strides = [1, 1]} : vector<64x64xf32> to vector<16x64xf32>
    %12 = vector.extract_strided_slice %10 {offsets = [16, 0], sizes = [16, 64], strides = [1, 1]} : vector<64x64xf32> to vector<16x64xf32>
    %13 = arith.maximumf %11, %12 : vector<16x64xf32>
    %14 = vector.extract_strided_slice %10 {offsets = [32, 0], sizes = [16, 64], strides = [1, 1]} : vector<64x64xf32> to vector<16x64xf32>
    %15 = arith.maximumf %13, %14 : vector<16x64xf32>
    %16 = vector.extract_strided_slice %10 {offsets = [48, 0], sizes = [16, 64], strides = [1, 1]} : vector<64x64xf32> to vector<16x64xf32>
    %17 = arith.maximumf %15, %16 : vector<16x64xf32>
    %c0_10 = arith.constant 0 : index
    %c0_11 = arith.constant 0 : index
    %18 = vector.load %arg3[%c0_10, %c0_11] : memref<1x64xf32, #tpu.memory_space<vmem>>, vector<1x64xf32>
    %19 = vector.broadcast %18 : vector<1x64xf32> to vector<16x64xf32>
    %20 = arith.addf %17, %19 : vector<16x64xf32>
    %cst_12 = arith.constant 0.000000e+00 : f32
    %21 = vector.broadcast %cst_12 : f32 to vector<16x64xf32>
    %22 = arith.maximumf %20, %21 : vector<16x64xf32>
    %23 = arith.truncf %22 : vector<16x64xf32> to vector<16x64xbf16>
    %c0_13 = arith.constant 0 : index
    %c0_14 = arith.constant 0 : index
    %24 = vector.load %arg4[%c0_13, %c0_14] : memref<16x64xbf16, #tpu.memory_space<vmem>>, vector<16x64xbf16>
    tpu.vector_store %arg4[%c0_13, %c0_14], %23 {strides = array<i32>} : memref<16x64xbf16, #tpu.memory_space<vmem>>, vector<16x64xbf16>,
    return
  }
  func.func @transform_0(%arg0: i32) -> (i32, i32, i32) {
    %c0_i32 = arith.constant 0 : i32
    %c0_i32_0 = arith.constant 0 : i32
    %c0_i32_1 = arith.constant 0 : i32
    return %c0_i32, %arg0, %c0_i32_0 : i32, i32, i32
  }
  func.func @transform_1(%arg0: i32) -> (i32, i32) {
    %c0_i32 = arith.constant 0 : i32
    %c0_i32_0 = arith.constant 0 : i32
    %c0_i32_1 = arith.constant 0 : i32
    return %c0_i32, %c0_i32_0 : i32, i32
  }
  func.func @transform_2(%arg0: i32) -> (i32, i32) {
    %c0_i32 = arith.constant 0 : i32
    %c0_i32_0 = arith.constant 0 : i32
    %c0_i32_1 = arith.constant 0 : i32
    return %c0_i32, %c0_i32_0 : i32, i32
  }
  func.func @transform_3(%arg0: i32) -> (i32, i32) {
    %c0_i32 = arith.constant 0 : i32
    %c0_i32_0 = arith.constant 0 : i32
    return %arg0, %c0_i32 : i32, i32
  }
}

module attributes {stable_mosaic.version = 11 : i64} {
  func.func @_mm_bias_act_kernel(%arg0: i32, %arg1: memref<32x256xbf16, #tpu.memory_space<vmem>>, %arg2: memref<256x512xbf16, #tpu.memory_space<vmem>>, %arg3: memref<1x512xf32, #tpu.memory_space<vmem>>, %arg4: memref<32x512xbf16, #tpu.memory_space<vmem>>) attributes {dimension_semantics = [#tpu.dimension_semantics<parallel>], iteration_bounds = array<i64: 1>, scalar_prefetch = 0 : i64, scratch_operands = 0 : i64, tpu.core_type = #tpu.core_type<tc>, window_params = [{transform_indices = @transform_0, window_bounds = array<i64: 32, 256>}, {pipeline_mode = #tpu.pipeline_mode<synchronous>, transform_indices = @transform_1, window_bounds = array<i64: 256, 512>}, {pipeline_mode = #tpu.pipeline_mode<synchronous>, transform_indices = @transform_2, window_bounds = array<i64: 1, 512>}, {transform_indices = @transform_3, window_bounds = array<i64: 32, 512>}]} {
    %c0 = arith.constant 0 : index
    %c0_0 = arith.constant 0 : index
    %0 = vector.load %arg1[%c0, %c0_0] : memref<32x256xbf16, #tpu.memory_space<vmem>>, vector<32x256xbf16>
    %c0_1 = arith.constant 0 : index
    %c0_2 = arith.constant 0 : index
    %1 = vector.load %arg2[%c0_1, %c0_2] : memref<256x512xbf16, #tpu.memory_space<vmem>>, vector<256x512xbf16>
    %cst = arith.constant dense<0.000000e+00> : vector<32x512xf32>
    %2 = tpu.matmul %0, %1, %cst {dimension_numbers = #tpu.dot_dimension_numbers<[1], [0], [0], [1], [0, 0, 1, 1], [], []>} : vector<32x256xbf16>, vector<256x512xbf16>, vector<32x512xf32> -> vector<32x512xf32>
    %c0_3 = arith.constant 0 : index
    %c0_4 = arith.constant 0 : index
    %3 = vector.load %arg3[%c0_3, %c0_4] : memref<1x512xf32, #tpu.memory_space<vmem>>, vector<1x512xf32>
    %4 = vector.broadcast %3 : vector<1x512xf32> to vector<32x512xf32>
    %5 = arith.addf %2, %4 : vector<32x512xf32>
    %cst_5 = arith.constant 0.000000e+00 : f32
    %6 = vector.broadcast %cst_5 : f32 to vector<32x512xf32>
    %7 = arith.maximumf %5, %6 : vector<32x512xf32>
    %8 = arith.truncf %7 : vector<32x512xf32> to vector<32x512xbf16>
    %c0_6 = arith.constant 0 : index
    %c0_7 = arith.constant 0 : index
    %9 = vector.load %arg4[%c0_6, %c0_7] : memref<32x512xbf16, #tpu.memory_space<vmem>>, vector<32x512xbf16>
    tpu.vector_store %arg4[%c0_6, %c0_7], %8 {strides = array<i32>} : memref<32x512xbf16, #tpu.memory_space<vmem>>, vector<32x512xbf16>,
    return
  }
  func.func @transform_0(%arg0: i32) -> (i32, i32) {
    %c0_i32 = arith.constant 0 : i32
    %c0_i32_0 = arith.constant 0 : i32
    return %arg0, %c0_i32 : i32, i32
  }
  func.func @transform_1(%arg0: i32) -> (i32, i32) {
    %c0_i32 = arith.constant 0 : i32
    %c0_i32_0 = arith.constant 0 : i32
    %c0_i32_1 = arith.constant 0 : i32
    return %c0_i32, %c0_i32_0 : i32, i32
  }
  func.func @transform_2(%arg0: i32) -> (i32, i32) {
    %c0_i32 = arith.constant 0 : i32
    %c0_i32_0 = arith.constant 0 : i32
    %c0_i32_1 = arith.constant 0 : i32
    return %c0_i32, %c0_i32_0 : i32, i32
  }
  func.func @transform_3(%arg0: i32) -> (i32, i32) {
    %c0_i32 = arith.constant 0 : i32
    %c0_i32_0 = arith.constant 0 : i32
    return %arg0, %c0_i32 : i32, i32
  }
}

module attributes {stable_mosaic.version = 11 : i64} {
  func.func @_mm_relu_mm_tanh_kernel(%arg0: i32, %arg1: memref<48x512xbf16, #tpu.memory_space<vmem>>, %arg2: memref<512x576xbf16, #tpu.memory_space<vmem>>, %arg3: memref<1x576xf32, #tpu.memory_space<vmem>>, %arg4: memref<576x36xbf16, #tpu.memory_space<vmem>>, %arg5: memref<1x36xf32, #tpu.memory_space<vmem>>, %arg6: memref<48x36xf32, #tpu.memory_space<vmem>>) attributes {dimension_semantics = [#tpu.dimension_semantics<parallel>], iteration_bounds = array<i64: 2>, scalar_prefetch = 0 : i64, scratch_operands = 0 : i64, tpu.core_type = #tpu.core_type<tc>, window_params = [{transform_indices = @transform_0, window_bounds = array<i64: 48, 512>}, {pipeline_mode = #tpu.pipeline_mode<synchronous>, transform_indices = @transform_1, window_bounds = array<i64: 512, 576>}, {pipeline_mode = #tpu.pipeline_mode<synchronous>, transform_indices = @transform_2, window_bounds = array<i64: 1, 576>}, {pipeline_mode = #tpu.pipeline_mode<synchronous>, transform_indices = @transform_3, window_bounds = array<i64: 576, 36>}, {pipeline_mode = #tpu.pipeline_mode<synchronous>, transform_indices = @transform_4, window_bounds = array<i64: 1, 36>}, {transform_indices = @transform_5, window_bounds = array<i64: 48, 36>}]} {
    %c0 = arith.constant 0 : index
    %c0_0 = arith.constant 0 : index
    %0 = vector.load %arg1[%c0, %c0_0] : memref<48x512xbf16, #tpu.memory_space<vmem>>, vector<48x512xbf16>
    %c0_1 = arith.constant 0 : index
    %c0_2 = arith.constant 0 : index
    %1 = vector.load %arg2[%c0_1, %c0_2] : memref<512x576xbf16, #tpu.memory_space<vmem>>, vector<512x576xbf16>
    %cst = arith.constant dense<0.000000e+00> : vector<48x576xf32>
    %2 = tpu.matmul %0, %1, %cst {dimension_numbers = #tpu.dot_dimension_numbers<[1], [0], [0], [1], [0, 0, 1, 1], [], []>} : vector<48x512xbf16>, vector<512x576xbf16>, vector<48x576xf32> -> vector<48x576xf32>
    %c0_3 = arith.constant 0 : index
    %c0_4 = arith.constant 0 : index
    %3 = vector.load %arg3[%c0_3, %c0_4] : memref<1x576xf32, #tpu.memory_space<vmem>>, vector<1x576xf32>
    %4 = vector.broadcast %3 : vector<1x576xf32> to vector<48x576xf32>
    %5 = arith.addf %2, %4 : vector<48x576xf32>
    %cst_5 = arith.constant 0.000000e+00 : f32
    %6 = vector.broadcast %cst_5 : f32 to vector<48x576xf32>
    %7 = arith.maximumf %5, %6 : vector<48x576xf32>
    %8 = arith.truncf %7 : vector<48x576xf32> to vector<48x576xbf16>
    %c0_6 = arith.constant 0 : index
    %c0_7 = arith.constant 0 : index
    %9 = vector.load %arg4[%c0_6, %c0_7] : memref<576x36xbf16, #tpu.memory_space<vmem>>, vector<576x36xbf16>
    %cst_8 = arith.constant dense<0.000000e+00> : vector<48x36xf32>
    %10 = tpu.matmul %8, %9, %cst_8 {dimension_numbers = #tpu.dot_dimension_numbers<[1], [0], [0], [1], [0, 0, 1, 1], [], []>} : vector<48x576xbf16>, vector<576x36xbf16>, vector<48x36xf32> -> vector<48x36xf32>
    %c0_9 = arith.constant 0 : index
    %c0_10 = arith.constant 0 : index
    %11 = vector.load %arg5[%c0_9, %c0_10] : memref<1x36xf32, #tpu.memory_space<vmem>>, vector<1x36xf32>
    %12 = vector.broadcast %11 : vector<1x36xf32> to vector<48x36xf32>
    %13 = arith.addf %10, %12 : vector<48x36xf32>
    %14 = math.tanh %13 : vector<48x36xf32>
    %c0_11 = arith.constant 0 : index
    %c0_12 = arith.constant 0 : index
    %15 = vector.load %arg6[%c0_11, %c0_12] : memref<48x36xf32, #tpu.memory_space<vmem>>, vector<48x36xf32>
    tpu.vector_store %arg6[%c0_11, %c0_12], %14 {strides = array<i32>} : memref<48x36xf32, #tpu.memory_space<vmem>>, vector<48x36xf32>,
    return
  }
  func.func @transform_0(%arg0: i32) -> (i32, i32) {
    %c0_i32 = arith.constant 0 : i32
    %c0_i32_0 = arith.constant 0 : i32
    return %arg0, %c0_i32 : i32, i32
  }
  func.func @transform_1(%arg0: i32) -> (i32, i32) {
    %c0_i32 = arith.constant 0 : i32
    %c0_i32_0 = arith.constant 0 : i32
    %c0_i32_1 = arith.constant 0 : i32
    return %c0_i32, %c0_i32_0 : i32, i32
  }
  func.func @transform_2(%arg0: i32) -> (i32, i32) {
    %c0_i32 = arith.constant 0 : i32
    %c0_i32_0 = arith.constant 0 : i32
    %c0_i32_1 = arith.constant 0 : i32
    return %c0_i32, %c0_i32_0 : i32, i32
  }
  func.func @transform_3(%arg0: i32) -> (i32, i32) {
    %c0_i32 = arith.constant 0 : i32
    %c0_i32_0 = arith.constant 0 : i32
    %c0_i32_1 = arith.constant 0 : i32
    return %c0_i32, %c0_i32_0 : i32, i32
  }
  func.func @transform_4(%arg0: i32) -> (i32, i32) {
    %c0_i32 = arith.constant 0 : i32
    %c0_i32_0 = arith.constant 0 : i32
    %c0_i32_1 = arith.constant 0 : i32
    return %c0_i32, %c0_i32_0 : i32, i32
  }
  func.func @transform_5(%arg0: i32) -> (i32, i32) {
    %c0_i32 = arith.constant 0 : i32
    %c0_i32_0 = arith.constant 0 : i32
    return %arg0, %c0_i32 : i32, i32
  }
}

</mosaic_0001>

<bundles_post_ra>
// kernel: tile.12
= control target key start
LH: loop header
LB: loop body
LE: loop exit
PB: predicated region body
PF: predicated region fallthrough
CT: control target
= control target key end

     0   :  { %s22_s0 = inlined_call_operand.vmem [shape: f32[128], index: 0, kind: input, shape index: {}]   ;;  %s23_s1 = inlined_call_operand.vmem [shape: f32[4,128], index: 1, kind: output, shape index: {}]  }
   0x1   :  { %v4_v0 = vld [vmem:[%s22_s0] ss:$0 sm:$0xff] }
   0x2   :  { %5 = vst [vmem:[%s23_s1] sm:$0xf] %v4_v0 }

// kernel: tile.16
= control target key start
LH: loop header
LB: loop body
LE: loop exit
PB: predicated region body
PF: predicated region fallthrough
CT: control target
= control target key end

     0   :  { %s28_s0 = inlined_call_operand.vmem [shape: f32[64], index: 0, kind: input, shape index: {}]   ;;  %s29_s1 = inlined_call_operand.vmem [shape: f32[9,64], index: 1, kind: output, shape index: {}]  }
   0x1   :  { %v4_v0 = vld [vmem:[%s28_s0] ss:$0 sm:$0xff] }
   0x2   :  { %5 = vst [vmem:[%s29_s1] sm:$0xff] %v4_v0  ;;  %8 = vst [vmem:[%s29_s1 + $0x8] sm:$0xff] %v4_v0 }

// kernel: tile.17
= control target key start
LH: loop header
LB: loop body
LE: loop exit
PB: predicated region body
PF: predicated region fallthrough
CT: control target
= control target key end

     0   :  { %vm3_vm0 = vcmask 523264   ;;  %s57_s8 = smov 64   ;;  %vm11_vm1 = vcmask 1048064   ;;  %s89_s0 = inlined_call_operand.vmem [shape: f32[9,64], index: 0, kind: input, shape index: {}]   ;;  %s90_s1 = inlined_call_operand.vmem [shape: f32[1,576], index: 1, kind: output, shape index: {}]  }
   0x1   :  { %v51_v0 = vld [vmem:[%s89_s0 + $0x1] ss:$2 sm:$0xf]   ;;  %v2_v1 = vld [vmem:[%s89_s0] ss:$2 sm:$0x1f]  }
   0x2   :  { %9 = vrot.lane.b32.xlu0 %v51_v0, %s57_s8  ;;  %4 = vst.msk [vmem:[#allocation0] ss:$8 sm:$0xf] %vm3_vm0, %v2_v1   ;;  %6 = vst.msk [vmem:[#allocation0 + $0x1c] sm:$0x10] %vm3_vm0, %v2_v1  }
   0x9   :  { %v42_v2 = vld [vmem:[#allocation0 + $0x20] sm:$0x1] }
   0xa   :  { %55 = vst [vmem:[%s90_s1 + $0x4] sm:$0x1] %v42_v2 }
  0x74   :  { %v10_v3 = vpop.permute.xlu0 %9  }
  0x75   :  { %12 = vst.msk [vmem:[#allocation0] ss:$8 sm:$0xf] %vm11_vm1, %v10_v3  }
  0x7c   :  { %v17_v4 = vld [vmem:[#allocation0] sm:$0x1]  ;;  %v22_v5 = vld [vmem:[#allocation0 + $0x8] sm:$0x1]  ;;  %v28_v6 = vld [vmem:[#allocation0 + $0x10] sm:$0x1] }
  0x7d   :  { %20 = vst [vmem:[%s90_s1] sm:$0x1] %v17_v4  ;;  %52 = vst [vmem:[%s90_s1 + $0x1] sm:$0x1] %v22_v5  ;;  %v35_v7 = vld [vmem:[#allocation0 + $0x18] sm:$0x1] }
  0x7e   :  { %53 = vst [vmem:[%s90_s1 + $0x2] sm:$0x1] %v28_v6  ;;  %54 = vst [vmem:[%s90_s1 + $0x3] sm:$0x1] %v35_v7 }

// kernel: autoencoder_forward.4
= control target key start
LH: loop header
LB: loop body
LE: loop exit
PB: predicated region body
PF: predicated region fallthrough
CT: control target
= control target key end

     0   :  { %s743_s12 = smov 0   ;;  %s745_s13 = smov 0   ;;  %s809_s0 = inlined_call_operand.vmem [shape: bf16[4,64,9], index: 0, kind: input, shape index: {}]   ;;  %s810_s1 = inlined_call_operand.vmem [shape: bf16[9,16], index: 1, kind: input, shape index: {}]   ;;  %s811_s2 = inlined_call_operand.vmem [shape: f32[1,16], index: 2, kind: input, shape index: {}]   ;;  %s812_s3 = inlined_call_operand.vmem [shape: bf16[64,16], index: 3, kind: output, shape index: {}]  }
   0x1   :  { %s747_s14 = smov 0  }
   0x2 LB: > { %s583_s15 = sadd.s32 4294967295, %s720_s14   ;;  %s760_s16 = sadd.s32 1, %s720_s14   ;;  %s720_s14 = sphi %s747_s14, %s815_s14   ;;  %s716_s13 = sphi %s745_s13, %s814_s13   ;;  %s712_s12 = sphi %s743_s12, %s813_s12  }
   0x3   : > { %s17_s17 = ssub.s32 %s720_s14, %s760_s16  ;;  %s20_s18 = sadd.s32 1, %s716_s13 }
   0x4   : > { %p18_p0 = scmp.eq.s32.totalorder %s17_s17, 0  ;;  %p27_p1 = scmp.ne.s32.totalorder %s716_s13, %s712_s12 }
   0x5   : > { %p28_p2 = scmp.eq.s32.totalorder %s720_s14, 0  ;;  %p586_p4 = scmp.ge.s32.totalorder %s720_s14, 2 }
   0x6   : > { %s769_s19 = scalar_select %p18_p0, %s716_s13, %s20_s18  }
   0x7   : > { %p29_p3 = por %p28_p2, %p27_p1  ;;  %127 = sbr.rel (%p586_p4) target bundleno = 20 (0x14), region = 24 }
   0xc   : > { %130 = sbr.rel (!%p29_p3) target bundleno = 20 (0x14), region = 28  ;;  %s132_s20 = sand.u32 (%p29_p3), 1, %s716_s13  }
   0xd   : > { %s630_s21 = sshll.u32 (%p29_p3), %s720_s14, 4  ;;  %s587_s22 = sshll.u32 (%p29_p3), %s132_s20, 6 }
   0xe   : > { %s137_s25 = scalar_lea.vmem (%p29_p3), %s809_s0, %s630_s21  ;;  %s134_s26 = scalar_lea.vmem (%p29_p3), [#allocation2], %s587_s22 }
   0xf   : > { %v154_v0 = vld [vmem:[%s137_s25] sm:$0xff] (%p29_p3)   ;;  %v158_v1 = vld [vmem:[%s137_s25 + $0x8] sm:$0xff] (%p29_p3)  }
  0x10   : > { %v162_v2 = vld [vmem:[%s137_s25 + $0x20] sm:$0xff] (%p29_p3)   ;;  %155 = vst [vmem:[%s134_s26] sm:$0xff] (%p29_p3), %v154_v0   ;;  %159 = vst [vmem:[%s134_s26 + $0x8] sm:$0xff] (%p29_p3), %v158_v1   ;;  %v166_v3 = vld [vmem:[%s137_s25 + $0x28] sm:$0xff] (%p29_p3)  }
  0x11   : > { %163 = vst [vmem:[%s134_s26 + $0x10] sm:$0xff] %v162_v2   ;;  %v170_v4 = vld [vmem:[%s137_s25 + $0x40] sm:$0xff]   ;;  %v174_v5 = vld [vmem:[%s137_s25 + $0x48] sm:$0xff]   ;;  %167 = vst [vmem:[%s134_s26 + $0x18] sm:$0xff] %v166_v3  }
  0x12   : > { %171 = vst [vmem:[%s134_s26 + $0x20] sm:$0xff] %v170_v4   ;;  %175 = vst [vmem:[%s134_s26 + $0x28] sm:$0xff] %v174_v5   ;;  %v178_v6 = vld [vmem:[%s137_s25 + $0x60] sm:$0xff]   ;;  %v182_v7 = vld [vmem:[%s137_s25 + $0x68] sm:$0xff]  }
  0x13   : > { %179 = vst [vmem:[%s134_s26 + $0x30] sm:$0xff] %v178_v6   ;;  %183 = vst [vmem:[%s134_s26 + $0x38] sm:$0xff] %v182_v7  }
  0x14 PF: > { %p590_p5 = scmp.ge.s32.totalorder %s720_s14, 1  ;;  %p240_p6 = scmp.lt.s32.totalorder %s720_s14, 3 }
  0x16   : > { %p241_p7 = pnand %p590_p5, %p240_p6 }
  0x17   : > { %s247_s29 = sand.u32 (!%p241_p7), 1, %s712_s12   ;;  %s592_s5 = sshll.u32 (!%p241_p7), %s583_s15, 2 }
  0x18   : > { %244 = sbr.rel (%p241_p7) target bundleno = 258 (0x102), region = 69  ;;  %s591_s30 = sshll.u32 (!%p241_p7), %s247_s29, 6 }
  0x19   : > { %s249_s4 = scalar_lea.vmem (!%p241_p7), [#allocation2], %s591_s30  ;;  %p272_p8 = scmp.lt.s32.totalorder (!%p241_p7), %s592_s5, 7 }
  0x1d   : > { %v689_v8 = vld [vmem:[%s810_s1] sm:$0x1f]   ;;  %vm369_vm0 = vcmask 1043456   ;;  %vm370_vm1 = vcmask 1044480   ;;  %v722_v9 = vmov 65535   ;;  %vm344_vm2 = vcmask 72704  }
  0x1e   : > { %v371_v10 = vsel %vm369_vm0, 4294967295, %v722_v9  ;;  %v690_v13 = vld [vmem:[%s249_s4] sm:$0xff]   ;;  %v692_v15 = vld [vmem:[%s249_s4 + $0x8] sm:$0xff]   ;;  %v694_v17 = vld [vmem:[%s249_s4 + $0x10] sm:$0xff]   ;;  %s817_s5 = smov (!%p272_p8, %s592_s5), 7  ;;  %vm516_vm3 = vcmask 125952  }
  0x1f   : > { %v372_v11 = vsel %vm370_vm1, %v371_v10, 0  ;;  %v691_v14 = vld [vmem:[%s249_s4 + $0x20] sm:$0xff]   ;;  %v693_v16 = vld [vmem:[%s249_s4 + $0x28] sm:$0xff]   ;;  %646 = vmatprep.mubr.msk.bf16.mxu0 %vm344_vm2, %v690_v13  ;;  %v695_v18 = vld [vmem:[%s249_s4 + $0x30] sm:$0xff]   ;;  %s593_s8 = sshll.u32 %s817_s5, 2 }
  0x20   : > { %v374_v12 = vand.u32 %v689_v8, %v372_v11  ;;  %654 = vmatprep.mubr.msk.bf16.mxu1 %vm344_vm2, %v691_v14  ;;  %v696_v19 = vld [vmem:[%s249_s4 + $0x18] sm:$0xff]   ;;  %v623_v42 = vld [vmem:[%s811_s2] ss:$0 sm:$0xff]  ;;  %s275_s11 = scalar_lea.vmem %s812_s3, %s593_s8 }
  0x21   : > { %v697_v20 = vld [vmem:[%s249_s4 + $0x38] sm:$0xff]  }
  0x22   : > { %644 = vmatprep.subr.bf16.mxu0 %v374_v12  ;;  %662 = vmatprep.subr.bf16.mxu1 %v374_v12 }
  0x23   : > { %645 = vmatpush3.bf16.msra.mxu0 %v374_v12  ;;  %663 = vmatpush3.bf16.msra.mxu1 %v374_v12 }
  0x26   : > { %647 = vmatmul.mubr.msk.bf16.vlgmr.msra.gmra.mxu0 %vm344_vm2, %v692_v15  ;;  %655 = vmatmul.mubr.msk.bf16.vlgmr.msra.gmra.mxu1 %vm344_vm2, %v693_v16 }
  0x27   : > { %650 = vmatprep.mubr.msk.bf16.mxu0 %vm344_vm2, %v694_v17  ;;  %658 = vmatprep.mubr.msk.bf16.mxu1 %vm344_vm2, %v695_v18 }
  0x2e   : > { %651 = vmatmul.mubr.msk.bf16.gmra.mxu0 %vm344_vm2, %v696_v19  ;;  %659 = vmatmul.mubr.msk.bf16.gmra.mxu1 %vm344_vm2, %v697_v20 }
  0xe6   : > { %v648_v21 = vpop.f32.mrf.mxu0  ;;  %v656_v22 = vpop.f32.mrf.mxu1 }
  0xe8   : > { %v410_v23 = vpop.f32.mrf.mxu0  ;;  %v442_v24 = vpop.f32.mrf.mxu1 }
  0xea   : > { %v649_v25 = vpop.f32.mrf.mxu0  ;;  %v657_v26 = vpop.f32.mrf.mxu1 }
  0xec   : > { %v413_v27 = vpop.f32.mrf.mxu0  ;;  %v445_v28 = vpop.f32.mrf.mxu1 }
  0xee   : > { %v652_v29 = vpop.f32.mrf.mxu0  ;;  %v660_v30 = vpop.f32.mrf.mxu1 }
  0xef   : > { %v475_v31 = vmax.f32 %v648_v21, %v652_v29 }
  0xf0   : > { %v426_v32 = vpop.f32.mrf.mxu0  ;;  %v458_v33 = vpop.f32.mrf.mxu1 }
  0xf1   : > { %v479_v34 = vmax.f32 %v475_v31, %v656_v22  ;;  %v473_v35 = vmax.f32 %v410_v23, %v426_v32 }
  0xf2   : > { %v653_v36 = vpop.f32.mrf.mxu0  ;;  %v661_v40 = vpop.f32.mrf.mxu1 }
  0xf3   : > { %v477_v37 = vmax.f32 %v473_v35, %v442_v24  ;;  %v476_v38 = vmax.f32 %v649_v25, %v653_v36  ;;  %v483_v39 = vmax.f32 %v479_v34, %v660_v30 }
  0xf4   : > { %v429_v41 = vpop.f32.mrf.mxu0  ;;  %v461_v50 = vpop.f32.mrf.mxu1 }
  0xf5   : > { %v481_v43 = vmax.f32 %v477_v37, %v458_v33  ;;  %v480_v44 = vmax.f32 %v476_v38, %v657_v26  ;;  %v474_v45 = vmax.f32 %v413_v27, %v429_v41  ;;  %v494_v49 = vadd.f32 %v623_v42, %v483_v39 }
  0xf7   : > { %v492_v46 = vadd.f32 %v623_v42, %v481_v43  ;;  %v484_v47 = vmax.f32 %v480_v44, %v661_v40  ;;  %v478_v48 = vmax.f32 %v474_v45, %v445_v28  ;;  %v498_v56 = vmax.f32 %v494_v49, 0.0 }
  0xf9   : > { %v496_v51 = vmax.f32 %v492_v46, 0.0  ;;  %v495_v52 = vadd.f32 %v623_v42, %v484_v47  ;;  %v482_v53 = vmax.f32 %v478_v48, %v461_v50  ;;  %v633_v60 = vpack.c.bf16 %v498_v56, %v498_v56 }
  0xfb   : > { %v631_v54 = vpack.c.bf16 %v496_v51, %v496_v51  ;;  %v493_v55 = vadd.f32 %v623_v42, %v482_v53  ;;  %v499_v57 = vmax.f32 %v495_v52, 0.0  ;;  %519 = vst.msk [vmem:[%s275_s11 + $0x8] sm:$0xf] %vm516_vm3, %v633_v60 }
  0xfd   : > { %517 = vst.msk [vmem:[%s275_s11] sm:$0xf] %vm516_vm3, %v631_v54  ;;  %v497_v58 = vmax.f32 %v493_v55, 0.0  ;;  %v634_v61 = vpack.c.bf16 %v499_v57, %v499_v57 }
  0xff   : > { %v632_v59 = vpack.c.bf16 %v497_v58, %v497_v58  ;;  %520 = vst.msk [vmem:[%s275_s11 + $0xc] sm:$0xf] %vm516_vm3, %v634_v61 }
 0x101   : > { %518 = vst.msk [vmem:[%s275_s11 + $0x4] sm:$0xf] %vm516_vm3, %v632_v59 }
 0x102 PF: > { %p10_p9 = scmp.ge.s32.totalorder %s760_s16, 4   ;;  %s813_s12 = smov %s716_s13 }
 0x103   : > { %s814_s13 = smov %s769_s19  ;;  %s815_s14 = smov %s760_s16 }
 0x104   :  { %12 = sbr.rel (!%p10_p9) target bundleno = 2 (0x2), region = 111 }

// kernel: autoencoder_forward.5
= control target key start
LH: loop header
LB: loop body
LE: loop exit
PB: predicated region body
PF: predicated region fallthrough
CT: control target
= control target key end

     0   :  { %v316_v0 = vmov 0   ;;  %vm134_vm0 = vcmask 130048   ;;  %vm237_vm1 = vcmask 519168   ;;  %s401_s1 = inlined_call_operand.vmem [shape: bf16[144,64], index: 1, kind: input, shape index: {}]   ;;  %s402_s0 = inlined_call_operand.vmem [shape: bf16[4,16,144], index: 0, kind: input, shape index: {}]   ;;  %s403_s2 = inlined_call_operand.vmem [shape: f32[1,64], index: 2, kind: input, shape index: {}]   ;;  %s404_s3 = inlined_call_operand.vmem [shape: bf16[16,64], index: 3, kind: output, shape index: {}]  }
   0x1   :  { %147 = vmatprep.subr.bf16.mxu0 %v316_v0  ;;  %276 = vmatprep.subr.bf16.mxu1 %v316_v0  ;;  %v295_v1 = vld [vmem:[%s401_s1 + $0x38] sm:$0xff]   ;;  %v296_v2 = vld [vmem:[%s401_s1 + $0x30] sm:$0xff]   ;;  %v297_v3 = vld [vmem:[%s401_s1 + $0x28] sm:$0xff]  }
   0x2   :  { %148 = vmatpush1.bf16.msra.mxu0 %v295_v1  ;;  %285 = vmatpush1.bf16.msra.mxu1 %v295_v1  ;;  %v298_v4 = vld [vmem:[%s401_s1 + $0x20] sm:$0xff]   ;;  %v299_v7 = vld [vmem:[%s401_s1 + $0x18] sm:$0xff]   ;;  %v300_v8 = vld [vmem:[%s401_s1 + $0x10] sm:$0xff]  }
   0x3   :  { %149 = vmatprep.subr.bf16.mxu0 %v316_v0  ;;  %277 = vmatprep.subr.bf16.mxu1 %v316_v0  ;;  %v306_v5 = vld [vmem:[%s402_s0 + $0x4] ss:$8 sps:$4 sm:$0xff]   ;;  %v304_v12 = vld [vmem:[%s402_s0] ss:$8 sps:$4 sm:$0xff]   ;;  %v310_v14 = vld [vmem:[%s402_s0 + $0x14] ss:$8 sps:$4 sm:$0xff]  }
   0x4   :  { %v309_v6 = vld [vmem:[%s402_s0 + $0x24] ss:$8 sps:$4 sm:$0xff]   ;;  %267 = vmatprep.mubr.msk.bf16.mxu0 %vm134_vm0, %v306_v5  ;;  %v307_v13 = vld [vmem:[%s402_s0 + $0x20] ss:$8 sps:$4 sm:$0xff]   ;;  %v312_v15 = vld [vmem:[%s402_s0 + $0x34] ss:$8 sps:$4 sm:$0xff]  }
   0x5   :  { %269 = vmatprep.mubr.msk.bf16.mxu1 %vm134_vm0, %v309_v6  ;;  %v301_v9 = vld [vmem:[%s401_s1 + $0x8] sm:$0xff]   ;;  %v302_v10 = vld [vmem:[%s401_s1] sm:$0xff]   ;;  %v314_v16 = vld [vmem:[%s402_s0 + $0x10] ss:$8 sps:$4 sm:$0xff]  }
   0x6   :  { %150 = vmatpush1.bf16.msra.mxu0 %v296_v2  ;;  %286 = vmatpush1.bf16.msra.mxu1 %v296_v2  ;;  %v303_v11 = vld [vmem:[%s401_s1 + $0x40] sm:$0xff]   ;;  %v315_v17 = vld [vmem:[%s402_s0 + $0x30] ss:$8 sps:$4 sm:$0xff]  }
   0x7   :  { %151 = vmatprep.subr.bf16.mxu0 %v316_v0  ;;  %278 = vmatprep.subr.bf16.mxu1 %v316_v0  ;;  %v271_v32 = vld [vmem:[%s403_s2] ss:$0 sm:$0xff] }
   0xa   :  { %152 = vmatpush1.bf16.msra.mxu0 %v297_v3  ;;  %287 = vmatpush1.bf16.msra.mxu1 %v297_v3 }
   0xb   :  { %153 = vmatprep.subr.bf16.mxu0 %v316_v0  ;;  %279 = vmatprep.subr.bf16.mxu1 %v316_v0 }
   0xe   :  { %154 = vmatpush1.bf16.msra.mxu0 %v298_v4  ;;  %288 = vmatpush1.bf16.msra.mxu1 %v298_v4 }
   0xf   :  { %155 = vmatprep.subr.bf16.mxu0 %v316_v0  ;;  %280 = vmatprep.subr.bf16.mxu1 %v316_v0 }
  0x12   :  { %156 = vmatpush1.bf16.msra.mxu0 %v299_v7  ;;  %289 = vmatpush1.bf16.msra.mxu1 %v299_v7 }
  0x13   :  { %157 = vmatprep.subr.bf16.mxu0 %v316_v0  ;;  %281 = vmatprep.subr.bf16.mxu1 %v316_v0 }
  0x16   :  { %158 = vmatpush1.bf16.msra.mxu0 %v300_v8  ;;  %290 = vmatpush1.bf16.msra.mxu1 %v300_v8 }
  0x17   :  { %159 = vmatprep.subr.bf16.mxu0 %v316_v0  ;;  %282 = vmatprep.subr.bf16.mxu1 %v316_v0 }
  0x1a   :  { %160 = vmatpush1.bf16.msra.mxu0 %v301_v9  ;;  %291 = vmatpush1.bf16.msra.mxu1 %v301_v9 }
  0x1b   :  { %161 = vmatprep.subr.bf16.mxu0 %v316_v0  ;;  %283 = vmatprep.subr.bf16.mxu1 %v316_v0 }
  0x1e   :  { %162 = vmatpush1.bf16.msra.mxu0 %v302_v10  ;;  %292 = vmatpush1.bf16.msra.mxu1 %v302_v10 }
  0x1f   :  { %177 = vmatprep.subr.bf16.mxu0 %v316_v0  ;;  %284 = vmatprep.subr.bf16.mxu1 %v316_v0 }
  0x22   :  { %178 = vmatpush2.bf16.msra.mxu0 %v303_v11  ;;  %293 = vmatpush2.bf16.msra.mxu1 %v303_v11 }
  0x25   :  { %180 = vmatmul.mubr.bf16.vlgmr.msra.gmra.mxu0 %v304_v12  ;;  %196 = vmatmul.mubr.bf16.vlgmr.msra.gmra.mxu1 %v307_v13 }
  0x26   :  { %268 = vmatprep.mubr.msk.bf16.mxu0 %vm134_vm0, %v310_v14  ;;  %270 = vmatprep.mubr.msk.bf16.mxu1 %vm134_vm0, %v312_v15 }
  0x2d   :  { %188 = vmatmul.mubr.bf16.gmra.mxu0 %v314_v16  ;;  %204 = vmatmul.mubr.bf16.gmra.mxu1 %v315_v17 }
  0xe5   :  { %v181_v18 = vpop.f32.mrf.mxu0  ;;  %v197_v19 = vpop.f32.mrf.mxu1 }
  0xe7   :  { %v183_v20 = vpop.f32.mrf.mxu0  ;;  %v199_v21 = vpop.f32.mrf.mxu1 }
  0xe9   :  { %v184_v22 = vpop.f32.mrf.mxu0  ;;  %v200_v23 = vpop.f32.mrf.mxu1 }
  0xeb   :  { %v186_v24 = vpop.f32.mrf.mxu0  ;;  %v202_v25 = vpop.f32.mrf.mxu1 }
  0xed   :  { %v189_v26 = vpop.f32.mrf.mxu0  ;;  %v205_v27 = vpop.f32.mrf.mxu1 }
  0xee   :  { %v212_v28 = vmax.f32 %v181_v18, %v189_v26 }
  0xef   :  { %v191_v29 = vpop.f32.mrf.mxu0  ;;  %v207_v30 = vpop.f32.mrf.mxu1 }
  0xf0   :  { %v214_v31 = vmax.f32 %v212_v28, %v197_v19 }
  0xf1   :  { %v192_v33 = vpop.f32.mrf.mxu0  ;;  %v208_v34 = vpop.f32.mrf.mxu1 }
  0xf2   :  { %v216_v35 = vmax.f32 %v214_v31, %v205_v27  ;;  %v213_v36 = vmax.f32 %v184_v22, %v192_v33 }
  0xf3   :  { %v194_v37 = vpop.f32.mrf.mxu0  ;;  %v210_v38 = vpop.f32.mrf.mxu1 }
  0xf4   :  { %v225_v39 = vadd.f32 %v271_v32, %v216_v35  ;;  %v215_v40 = vmax.f32 %v213_v36, %v200_v23 }
  0xf6   :  { %v227_v41 = vmax.f32 %v225_v39, 0.0  ;;  %v217_v42 = vmax.f32 %v215_v40, %v208_v34 }
  0xf8   :  { %v274_v43 = vpack.c.bf16 %v227_v41, %v227_v41  ;;  %v226_v44 = vadd.f32 %v271_v32, %v217_v42 }
  0xfa   :  { %238 = vst.msk [vmem:[%s404_s3] sm:$0xf] %vm237_vm1, %v274_v43  ;;  %v228_v45 = vmax.f32 %v226_v44, 0.0 }
  0xfc   :  { %v275_v46 = vpack.c.bf16 %v228_v45, %v228_v45 }
  0xfe   :  { %239 = vst.msk [vmem:[%s404_s3 + $0x4] sm:$0xf] %vm237_vm1, %v275_v46 }

// kernel: autoencoder_forward.6
= control target key start
LH: loop header
LB: loop body
LE: loop exit
PB: predicated region body
PF: predicated region fallthrough
CT: control target
= control target key end

     0   :  { %s1063_s1 = inlined_call_operand.vmem [shape: bf16[256,512], index: 1, kind: input, shape index: {}]   ;;  %s1064_s0 = inlined_call_operand.vmem [shape: bf16[32,256], index: 0, kind: input, shape index: {}]   ;;  %s1065_s2 = inlined_call_operand.vmem [shape: f32[1,512], index: 2, kind: input, shape index: {}]   ;;  %s1066_s3 = inlined_call_operand.vmem [shape: bf16[32,512], index: 3, kind: output, shape index: {}]  }
   0x1   :  { %v710_v0 = vld [vmem:[%s1063_s1 + $0xe4] ss:$16 sps:$4 sm:$0xff]   ;;  %v712_v1 = vld [vmem:[%s1063_s1 + $0xec] ss:$16 sps:$4 sm:$0xff]   ;;  %v714_v2 = vld [vmem:[%s1063_s1 + $0xe0] ss:$16 sps:$4 sm:$0xff]  }
   0x2   :  { %444 = vmatprep.subr.bf16.mxu0 %v710_v0  ;;  %v715_v3 = vld [vmem:[%s1063_s1 + $0xe8] ss:$16 sps:$4 sm:$0xff]   ;;  %497 = vmatprep.subr.bf16.mxu1 %v712_v1  ;;  %v716_v4 = vld [vmem:[%s1063_s1 + $0xc4] ss:$16 sps:$4 sm:$0xff]   ;;  %v718_v5 = vld [vmem:[%s1063_s1 + $0xcc] ss:$16 sps:$4 sm:$0xff]  }
   0x3   :  { %445 = vmatpush1.bf16.msra.mxu0 %v714_v2  ;;  %498 = vmatpush1.bf16.msra.mxu1 %v715_v3  ;;  %v720_v6 = vld [vmem:[%s1063_s1 + $0xc0] ss:$16 sps:$4 sm:$0xff]   ;;  %v721_v7 = vld [vmem:[%s1063_s1 + $0xc8] ss:$16 sps:$4 sm:$0xff]   ;;  %v722_v8 = vld [vmem:[%s1063_s1 + $0xa4] ss:$16 sps:$4 sm:$0xff]  }
   0x4   :  { %446 = vmatprep.subr.bf16.mxu0 %v716_v4  ;;  %499 = vmatprep.subr.bf16.mxu1 %v718_v5  ;;  %v724_v9 = vld [vmem:[%s1063_s1 + $0xac] ss:$16 sps:$4 sm:$0xff]   ;;  %v726_v10 = vld [vmem:[%s1063_s1 + $0xa0] ss:$16 sps:$4 sm:$0xff]   ;;  %v727_v11 = vld [vmem:[%s1063_s1 + $0xa8] ss:$16 sps:$4 sm:$0xff]   ;;  %v84_v4 = vlaneseq }
   0x5   :  { %v728_v12 = vld [vmem:[%s1063_s1 + $0x84] ss:$16 sps:$4 sm:$0xff]   ;;  %v730_v13 = vld [vmem:[%s1063_s1 + $0x8c] ss:$16 sps:$4 sm:$0xff]   ;;  %v732_v14 = vld [vmem:[%s1063_s1 + $0x80] ss:$16 sps:$4 sm:$0xff]  }
   0x6   :  { %v733_v15 = vld [vmem:[%s1063_s1 + $0x88] ss:$16 sps:$4 sm:$0xff]   ;;  %v734_v16 = vld [vmem:[%s1063_s1 + $0x64] ss:$16 sps:$4 sm:$0xff]   ;;  %v736_v17 = vld [vmem:[%s1063_s1 + $0x6c] ss:$16 sps:$4 sm:$0xff]  }
   0x7   :  { %447 = vmatpush1.bf16.msra.mxu0 %v720_v6  ;;  %500 = vmatpush1.bf16.msra.mxu1 %v721_v7  ;;  %v738_v18 = vld [vmem:[%s1063_s1 + $0x60] ss:$16 sps:$4 sm:$0xff]   ;;  %v739_v19 = vld [vmem:[%s1063_s1 + $0x68] ss:$16 sps:$4 sm:$0xff]   ;;  %v740_v20 = vld [vmem:[%s1063_s1 + $0x44] ss:$16 sps:$4 sm:$0xff]  }
   0x8   :  { %448 = vmatprep.subr.bf16.mxu0 %v722_v8  ;;  %501 = vmatprep.subr.bf16.mxu1 %v724_v9  ;;  %v742_v21 = vld [vmem:[%s1063_s1 + $0x4c] ss:$16 sps:$4 sm:$0xff]   ;;  %v744_v22 = vld [vmem:[%s1063_s1 + $0x40] ss:$16 sps:$4 sm:$0xff]   ;;  %v745_v23 = vld [vmem:[%s1063_s1 + $0x48] ss:$16 sps:$4 sm:$0xff]  }
   0x9   :  { %v746_v24 = vld [vmem:[%s1063_s1 + $0x24] ss:$16 sps:$4 sm:$0xff]   ;;  %v748_v25 = vld [vmem:[%s1063_s1 + $0x2c] ss:$16 sps:$4 sm:$0xff]   ;;  %v750_v26 = vld [vmem:[%s1063_s1 + $0x20] ss:$16 sps:$4 sm:$0xff]  }
   0xa   :  { %v751_v27 = vld [vmem:[%s1063_s1 + $0x28] ss:$16 sps:$4 sm:$0xff]   ;;  %v752_v28 = vld [vmem:[%s1063_s1 + $0x4] ss:$16 sps:$4 sm:$0xff]   ;;  %v754_v29 = vld [vmem:[%s1063_s1 + $0xc] ss:$16 sps:$4 sm:$0xff]  }
   0xb   :  { %449 = vmatpush1.bf16.msra.mxu0 %v726_v10  ;;  %502 = vmatpush1.bf16.msra.mxu1 %v727_v11  ;;  %v756_v30 = vld [vmem:[%s1063_s1] ss:$16 sps:$4 sm:$0xff]   ;;  %v757_v31 = vld [vmem:[%s1063_s1 + $0x8] ss:$16 sps:$4 sm:$0xff]   ;;  %v758_v32 = vld [vmem:[%s1063_s1 + $0x1e4] ss:$16 sps:$4 sm:$0xff]  }
   0xc   :  { %450 = vmatprep.subr.bf16.mxu0 %v728_v12  ;;  %503 = vmatprep.subr.bf16.mxu1 %v730_v13  ;;  %v760_v33 = vld [vmem:[%s1063_s1 + $0x1ec] ss:$16 sps:$4 sm:$0xff]   ;;  %v762_v34 = vld [vmem:[%s1063_s1 + $0x1e0] ss:$16 sps:$4 sm:$0xff]   ;;  %v763_v35 = vld [vmem:[%s1063_s1 + $0x1e8] ss:$16 sps:$4 sm:$0xff]  }
   0xd   :  { %v764_v36 = vld [vmem:[%s1063_s1 + $0x1c4] ss:$16 sps:$4 sm:$0xff]   ;;  %v766_v37 = vld [vmem:[%s1063_s1 + $0x1cc] ss:$16 sps:$4 sm:$0xff]   ;;  %v768_v38 = vld [vmem:[%s1063_s1 + $0x1c0] ss:$16 sps:$4 sm:$0xff]  }
   0xe   :  { %v769_v39 = vld [vmem:[%s1063_s1 + $0x1c8] ss:$16 sps:$4 sm:$0xff]   ;;  %v770_v40 = vld [vmem:[%s1063_s1 + $0x1a4] ss:$16 sps:$4 sm:$0xff]   ;;  %v772_v41 = vld [vmem:[%s1063_s1 + $0x1ac] ss:$16 sps:$4 sm:$0xff]  }
   0xf   :  { %451 = vmatpush1.bf16.msra.mxu0 %v732_v14  ;;  %504 = vmatpush1.bf16.msra.mxu1 %v733_v15  ;;  %v774_v42 = vld [vmem:[%s1063_s1 + $0x1a0] ss:$16 sps:$4 sm:$0xff]   ;;  %v775_v43 = vld [vmem:[%s1063_s1 + $0x1a8] ss:$16 sps:$4 sm:$0xff]   ;;  %v776_v44 = vld [vmem:[%s1063_s1 + $0x184] ss:$16 sps:$4 sm:$0xff]  }
  0x10   :  { %452 = vmatprep.subr.bf16.mxu0 %v734_v16  ;;  %505 = vmatprep.subr.bf16.mxu1 %v736_v17  ;;  %v778_v45 = vld [vmem:[%s1063_s1 + $0x18c] ss:$16 sps:$4 sm:$0xff]   ;;  %v780_v46 = vld [vmem:[%s1063_s1 + $0x180] ss:$16 sps:$4 sm:$0xff]   ;;  %v781_v48 = vld [vmem:[%s1063_s1 + $0x188] ss:$16 sps:$4 sm:$0xff]  }
  0x11   :  { %v808_v47 = vld [vmem:[%s1064_s0 + $0x4] ss:$8 sps:$4 sm:$0xff]   ;;  %v786_v51 = vld [vmem:[%s1063_s1 + $0x160] ss:$16 sps:$4 sm:$0xff]   ;;  %v787_v52 = vld [vmem:[%s1063_s1 + $0x168] ss:$16 sps:$4 sm:$0xff]  }
  0x12   :  { %v782_v49 = vld [vmem:[%s1063_s1 + $0x164] ss:$16 sps:$4 sm:$0xff]   ;;  %v784_v50 = vld [vmem:[%s1063_s1 + $0x16c] ss:$16 sps:$4 sm:$0xff]   ;;  %476 = vmatprep.mubr.bf16.mxu0 %v808_v47  ;;  %529 = vmatprep.mubr.bf16.mxu1 %v808_v47  ;;  %v792_v55 = vld [vmem:[%s1063_s1 + $0x140] ss:$16 sps:$4 sm:$0xff]  }
  0x13   :  { %453 = vmatpush1.bf16.msra.mxu0 %v738_v18  ;;  %506 = vmatpush1.bf16.msra.mxu1 %v739_v19  ;;  %v788_v53 = vld [vmem:[%s1063_s1 + $0x144] ss:$16 sps:$4 sm:$0xff]   ;;  %v790_v54 = vld [vmem:[%s1063_s1 + $0x14c] ss:$16 sps:$4 sm:$0xff]   ;;  %v793_v56 = vld [vmem:[%s1063_s1 + $0x148] ss:$16 sps:$4 sm:$0xff]  }
  0x14   :  { %454 = vmatprep.subr.bf16.mxu0 %v740_v20  ;;  %507 = vmatprep.subr.bf16.mxu1 %v742_v21  ;;  %v794_v57 = vld [vmem:[%s1063_s1 + $0x124] ss:$16 sps:$4 sm:$0xff]   ;;  %v796_v58 = vld [vmem:[%s1063_s1 + $0x12c] ss:$16 sps:$4 sm:$0xff]   ;;  %v798_v59 = vld [vmem:[%s1063_s1 + $0x120] ss:$16 sps:$4 sm:$0xff]  }
  0x15   :  { %v799_v60 = vld [vmem:[%s1063_s1 + $0x128] ss:$16 sps:$4 sm:$0xff]   ;;  %v800_v61 = vld [vmem:[%s1063_s1 + $0x104] ss:$16 sps:$4 sm:$0xff]   ;;  %v802_v62 = vld [vmem:[%s1063_s1 + $0x10c] ss:$16 sps:$4 sm:$0xff]  }
  0x16   :  { %v804_v63 = vld [vmem:[%s1063_s1 + $0x100] ss:$16 sps:$4 sm:$0xff]   ;;  %v805_v0 = vld [vmem:[%s1063_s1 + $0x108] ss:$16 sps:$4 sm:$0xff]   ;;  %v809_v2 = vld [vmem:[%s1064_s0 + $0x14] ss:$8 sps:$4 sm:$0xff]  }
  0x17   :  { %455 = vmatpush1.bf16.msra.mxu0 %v744_v22  ;;  %508 = vmatpush1.bf16.msra.mxu1 %v745_v23  ;;  %v806_v1 = vld [vmem:[%s1064_s0] ss:$8 sps:$4 sm:$0xff]   ;;  %v811_v3 = vld [vmem:[%s1064_s0 + $0x10] ss:$8 sps:$4 sm:$0xff]   ;;  %v85_v5 = vshrl.u32 %v84_v4, 7 }
  0x18   :  { %456 = vmatprep.subr.bf16.mxu0 %v746_v24  ;;  %509 = vmatprep.subr.bf16.mxu1 %v748_v25  ;;  %v82_v8 = vld [vmem:[%s1065_s2] sm:$0xf] }
  0x19   :  { %v86_v6 = vsub.s32 0, %v85_v5  ;;  %v94_v7 = vsub.s32 2, %v85_v5  ;;  %v90_v9 = vsub.s32 1, %v85_v5  ;;  %v98_v10 = vsub.s32 3, %v85_v5 }
  0x1b   :  { %457 = vmatpush1.bf16.msra.mxu0 %v750_v26  ;;  %510 = vmatpush1.bf16.msra.mxu1 %v751_v27  ;;  %v87_v11 = vrot.slane %v82_v8, %v86_v6  ;;  %v95_v12 = vrot.slane %v82_v8, %v94_v7  ;;  %v91_v13 = vrot.slane %v82_v8, %v90_v9 }
  0x1c   :  { %458 = vmatprep.subr.bf16.mxu0 %v752_v28  ;;  %511 = vmatprep.subr.bf16.mxu1 %v754_v29  ;;  %v99_v14 = vrot.slane %v82_v8, %v98_v10 }
  0x1f   :  { %459 = vmatpush1.bf16.msra.mxu0 %v756_v30  ;;  %512 = vmatpush1.bf16.msra.mxu1 %v757_v31 }
  0x20   :  { %460 = vmatprep.subr.bf16.mxu0 %v758_v32  ;;  %513 = vmatprep.subr.bf16.mxu1 %v760_v33 }
  0x23   :  { %461 = vmatpush2.bf16.msra.mxu0 %v762_v34  ;;  %514 = vmatpush2.bf16.msra.mxu1 %v763_v35 }
  0x24   :  { %462 = vmatprep.subr.bf16.mxu0 %v764_v36  ;;  %515 = vmatprep.subr.bf16.mxu1 %v766_v37 }
  0x27   :  { %463 = vmatpush2.bf16.msra.mxu0 %v768_v38  ;;  %516 = vmatpush2.bf16.msra.mxu1 %v769_v39 }
  0x28   :  { %464 = vmatprep.subr.bf16.mxu0 %v770_v40  ;;  %517 = vmatprep.subr.bf16.mxu1 %v772_v41 }
  0x2b   :  { %465 = vmatpush2.bf16.msra.mxu0 %v774_v42  ;;  %518 = vmatpush2.bf16.msra.mxu1 %v775_v43 }
  0x2c   :  { %466 = vmatprep.subr.bf16.mxu0 %v776_v44  ;;  %519 = vmatprep.subr.bf16.mxu1 %v778_v45 }
  0x2f   :  { %467 = vmatpush2.bf16.msra.mxu0 %v780_v46  ;;  %520 = vmatpush2.bf16.msra.mxu1 %v781_v48 }
  0x30   :  { %468 = vmatprep.subr.bf16.mxu0 %v782_v49  ;;  %521 = vmatprep.subr.bf16.mxu1 %v784_v50 }
  0x33   :  { %469 = vmatpush2.bf16.msra.mxu0 %v786_v51  ;;  %522 = vmatpush2.bf16.msra.mxu1 %v787_v52 }
  0x34   :  { %470 = vmatprep.subr.bf16.mxu0 %v788_v53  ;;  %523 = vmatprep.subr.bf16.mxu1 %v790_v54 }
  0x37   :  { %471 = vmatpush2.bf16.msra.mxu0 %v792_v55  ;;  %524 = vmatpush2.bf16.msra.mxu1 %v793_v56 }
  0x38   :  { %472 = vmatprep.subr.bf16.mxu0 %v794_v57  ;;  %525 = vmatprep.subr.bf16.mxu1 %v796_v58 }
  0x3b   :  { %473 = vmatpush2.bf16.msra.mxu0 %v798_v59  ;;  %526 = vmatpush2.bf16.msra.mxu1 %v799_v60 }
  0x3c   :  { %474 = vmatprep.subr.bf16.mxu0 %v800_v61  ;;  %527 = vmatprep.subr.bf16.mxu1 %v802_v62 }
  0x3f   :  { %475 = vmatpush2.bf16.msra.mxu0 %v804_v63  ;;  %528 = vmatpush2.bf16.msra.mxu1 %v805_v0 }
  0x42   :  { %477 = vmatmul.mubr.bf16.vlgmr.msra.gmra.mxu0 %v806_v1  ;;  %530 = vmatmul.mubr.bf16.vlgmr.msra.gmra.mxu1 %v806_v1 }
  0x43   :  { %486 = vmatprep.mubr.bf16.mxu0 %v809_v2  ;;  %539 = vmatprep.mubr.bf16.mxu1 %v809_v2 }
  0x4a   :  { %487 = vmatmul.mubr.bf16.gmra.mxu0 %v811_v3  ;;  %540 = vmatmul.mubr.bf16.gmra.mxu1 %v811_v3 }
 0x102   :  { %v478_v15 = vpop.f32.mrf.mxu0  ;;  %v531_v16 = vpop.f32.mrf.mxu1 }
 0x103   :  { %v479_v17 = vadd.f32 %v478_v15, %v87_v11  ;;  %v532_v18 = vadd.f32 %v531_v16, %v95_v12 }
 0x104   :  { %v480_v19 = vpop.f32.mrf.mxu0  ;;  %v533_v20 = vpop.f32.mrf.mxu1 }
 0x105   :  { %v481_v21 = vadd.f32 %v480_v19, %v91_v13  ;;  %v534_v22 = vadd.f32 %v533_v20, %v99_v14  ;;  %v550_v25 = vmax.f32 %v479_v17, 0.0  ;;  %v552_v26 = vmax.f32 %v532_v18, 0.0 }
 0x106   :  { %v482_v23 = vpop.f32.mrf.mxu0  ;;  %v535_v24 = vpop.f32.mrf.mxu1 }
 0x107   :  { %v551_v27 = vmax.f32 %v481_v21, 0.0  ;;  %v553_v28 = vmax.f32 %v534_v22, 0.0  ;;  %v483_v29 = vadd.f32 %v482_v23, %v87_v11  ;;  %v536_v30 = vadd.f32 %v535_v24, %v95_v12 }
 0x108   :  { %v484_v31 = vpop.f32.mrf.mxu0  ;;  %v537_v32 = vpop.f32.mrf.mxu1 }
 0x109   :  { %v702_v33 = vpack.c.bf16 %v551_v27, %v550_v25  ;;  %v703_v34 = vpack.c.bf16 %v553_v28, %v552_v26  ;;  %v485_v35 = vadd.f32 %v484_v31, %v91_v13  ;;  %v538_v36 = vadd.f32 %v537_v32, %v99_v14 }
 0x10a   :  { %v488_v37 = vpop.f32.mrf.mxu0  ;;  %v541_v38 = vpop.f32.mrf.mxu1  ;;  %v554_v41 = vmax.f32 %v483_v29, 0.0  ;;  %v556_v42 = vmax.f32 %v536_v30, 0.0 }
 0x10b   :  { %614 = vst [vmem:[%s1066_s3] sm:$0xff] %v702_v33  ;;  %615 = vst [vmem:[%s1066_s3 + $0x8] sm:$0xff] %v703_v34  ;;  %v489_v39 = vadd.f32 %v488_v37, %v87_v11  ;;  %v542_v40 = vadd.f32 %v541_v38, %v95_v12  ;;  %v555_v43 = vmax.f32 %v485_v35, 0.0  ;;  %v557_v44 = vmax.f32 %v538_v36, 0.0 }
 0x10c   :  { %v490_v45 = vpop.f32.mrf.mxu0  ;;  %v543_v46 = vpop.f32.mrf.mxu1 }
 0x10d   :  { %v491_v47 = vadd.f32 %v490_v45, %v91_v13  ;;  %v544_v48 = vadd.f32 %v543_v46, %v99_v14  ;;  %v704_v49 = vpack.c.bf16 %v555_v43, %v554_v41  ;;  %v705_v50 = vpack.c.bf16 %v557_v44, %v556_v42 }
 0x10e   :  { %v492_v51 = vpop.f32.mrf.mxu0  ;;  %v545_v52 = vpop.f32.mrf.mxu1  ;;  %v558_v53 = vmax.f32 %v489_v39, 0.0  ;;  %v560_v54 = vmax.f32 %v542_v40, 0.0 }
 0x10f   :  { %v559_v55 = vmax.f32 %v491_v47, 0.0  ;;  %v561_v56 = vmax.f32 %v544_v48, 0.0  ;;  %616 = vst [vmem:[%s1066_s3 + $0x10] sm:$0xff] %v704_v49  ;;  %617 = vst [vmem:[%s1066_s3 + $0x18] sm:$0xff] %v705_v50  ;;  %v493_v57 = vadd.f32 %v492_v51, %v87_v11  ;;  %v546_v58 = vadd.f32 %v545_v52, %v95_v12 }
 0x110   :  { %v494_v59 = vpop.f32.mrf.mxu0  ;;  %v547_v60 = vpop.f32.mrf.mxu1 }
 0x111   :  { %v706_v61 = vpack.c.bf16 %v559_v55, %v558_v53  ;;  %v707_v62 = vpack.c.bf16 %v561_v56, %v560_v54  ;;  %v495_v63 = vadd.f32 %v494_v59, %v91_v13  ;;  %v548_v0 = vadd.f32 %v547_v60, %v99_v14 }
 0x112   :  { %v562_v1 = vmax.f32 %v493_v57, 0.0  ;;  %v564_v2 = vmax.f32 %v546_v58, 0.0 }
 0x113   :  { %618 = vst [vmem:[%s1066_s3 + $0x20] sm:$0xff] %v706_v61  ;;  %619 = vst [vmem:[%s1066_s3 + $0x28] sm:$0xff] %v707_v62  ;;  %v563_v3 = vmax.f32 %v495_v63, 0.0  ;;  %v565_v4 = vmax.f32 %v548_v0, 0.0 }
 0x115   :  { %v708_v5 = vpack.c.bf16 %v563_v3, %v562_v1  ;;  %v709_v6 = vpack.c.bf16 %v565_v4, %v564_v2 }
 0x117   :  { %620 = vst [vmem:[%s1066_s3 + $0x30] sm:$0xff] %v708_v5  ;;  %621 = vst [vmem:[%s1066_s3 + $0x38] sm:$0xff] %v709_v6 }

// kernel: tile.9
= control target key start
LH: loop header
LB: loop body
LE: loop exit
PB: predicated region body
PF: predicated region fallthrough
CT: control target
= control target key end

     0   :  { %s20_s0 = inlined_call_operand.<no memory space> [shape: f32[], index: 0, kind: input, shape index: {}]   ;;  %s21_s1 = inlined_call_operand.vmem [shape: f32[1,36], index: 1, kind: output, shape index: {}]  }
   0x1   :  { %v2_v0 = vstv %s20_s0 }
   0x2   :  { %3 = vst [vmem:[%s21_s1] sm:$0x1] %v2_v0 }

// kernel: autoencoder_forward.7
= control target key start
LH: loop header
LB: loop body
LE: loop exit
PB: predicated region body
PF: predicated region fallthrough
CT: control target
= control target key end

     0   :  { %s3045_s18 = smov 0   ;;  %s3805_s0 = inlined_call_operand.vmem [shape: bf16[96,512], index: 0, kind: input, shape index: {}]   ;;  %s3806_s1 = inlined_call_operand.vmem [shape: bf16[512,576], index: 1, kind: input, shape index: {}]   ;;  %s3807_s2 = inlined_call_operand.vmem [shape: f32[1,576], index: 2, kind: input, shape index: {}]   ;;  %s3808_s3 = inlined_call_operand.vmem [shape: bf16[576,36], index: 3, kind: input, shape index: {}]   ;;  %s3809_s4 = inlined_call_operand.vmem [shape: f32[1,36], index: 4, kind: input, shape index: {}]   ;;  %s3810_s5 = inlined_call_operand.vmem [shape: f32[96,36], index: 5, kind: output, shape index: {}]  }
   0x1 LB: > { %s2311_s19 = sadd.s32 4294967295, %s3011_s18   ;;  %p2315_p0 = scmp.ge.s32.totalorder %s3011_s18, 1  ;;  %s3011_s18 = sphi %s3045_s18, %s15_s18  }
   0x2   : > { %p189_p1 = scmp.lt.s32.totalorder %s3011_s18, 3 }
   0x4   : > { %p190_p2 = pnand %p2315_p0, %p189_p1 }
   0x5   : > { %s218_s9 = smul.u32 (!%p190_p2), 6, %s2311_s19 }
   0x6   : > { %193 = sbr.rel (%p190_p2) target bundleno = 611 (0x263), region = 40 }
   0x7   : > { %p219_p3 = scmp.lt.s32.totalorder (!%p190_p2), %s218_s9, 11 }
   0xb   : > { %v2715_v0 = vld [vmem:[%s3806_s1 + $0x11c] ss:$20 sps:$4 sm:$0xff]   ;;  %v2719_v2 = vld [vmem:[%s3806_s1 + $0x118] ss:$20 sps:$4 sm:$0xff]   ;;  %v2721_v4 = vld [vmem:[%s3806_s1 + $0xf4] ss:$20 sps:$4 sm:$0xff]  }
   0xc   : > { %v2717_v1 = vld [vmem:[%s3806_s1 + $0x39c] ss:$20 sps:$4 sm:$0xff]   ;;  %1355 = vmatprep.subr.bf16.mxu0 %v2715_v0  ;;  %v2720_v3 = vld [vmem:[%s3806_s1 + $0x398] ss:$20 sps:$4 sm:$0xff]   ;;  %v2723_v5 = vld [vmem:[%s3806_s1 + $0x374] ss:$20 sps:$4 sm:$0xff]  }
   0xd   : > { %1418 = vmatprep.subr.bf16.mxu1 %v2717_v1  ;;  %1356 = vmatpush1.bf16.msra.mxu0 %v2719_v2  ;;  %v2725_v6 = vld [vmem:[%s3806_s1 + $0xf0] ss:$20 sps:$4 sm:$0xff]   ;;  %v2727_v8 = vld [vmem:[%s3806_s1 + $0xcc] ss:$20 sps:$4 sm:$0xff]   ;;  %v2731_v10 = vld [vmem:[%s3806_s1 + $0xc8] ss:$20 sps:$4 sm:$0xff]  }
   0xe   : > { %1419 = vmatpush1.bf16.msra.mxu1 %v2720_v3  ;;  %1357 = vmatprep.subr.bf16.mxu0 %v2721_v4  ;;  %v2726_v7 = vld [vmem:[%s3806_s1 + $0x370] ss:$20 sps:$4 sm:$0xff]   ;;  %v2729_v9 = vld [vmem:[%s3806_s1 + $0x34c] ss:$20 sps:$4 sm:$0xff]   ;;  %v2732_v11 = vld [vmem:[%s3806_s1 + $0x348] ss:$20 sps:$4 sm:$0xff]  }
   0xf   : > { %1420 = vmatprep.subr.bf16.mxu1 %v2723_v5  ;;  %v2733_v12 = vld [vmem:[%s3806_s1 + $0xa4] ss:$20 sps:$4 sm:$0xff]   ;;  %v2737_v14 = vld [vmem:[%s3806_s1 + $0xa0] ss:$20 sps:$4 sm:$0xff]   ;;  %v2739_v16 = vld [vmem:[%s3806_s1 + $0x7c] ss:$20 sps:$4 sm:$0xff]  }
  0x10   : > { %v2735_v13 = vld [vmem:[%s3806_s1 + $0x324] ss:$20 sps:$4 sm:$0xff]   ;;  %v2738_v15 = vld [vmem:[%s3806_s1 + $0x320] ss:$20 sps:$4 sm:$0xff]   ;;  %v2741_v17 = vld [vmem:[%s3806_s1 + $0x2fc] ss:$20 sps:$4 sm:$0xff]  }
  0x11   : > { %1358 = vmatpush1.bf16.msra.mxu0 %v2725_v6  ;;  %v2743_v18 = vld [vmem:[%s3806_s1 + $0x78] ss:$20 sps:$4 sm:$0xff]   ;;  %v2745_v20 = vld [vmem:[%s3806_s1 + $0x54] ss:$20 sps:$4 sm:$0xff]   ;;  %v2749_v22 = vld [vmem:[%s3806_s1 + $0x50] ss:$20 sps:$4 sm:$0xff]  }
  0x12   : > { %1421 = vmatpush1.bf16.msra.mxu1 %v2726_v7  ;;  %1359 = vmatprep.subr.bf16.mxu0 %v2727_v8  ;;  %v2744_v19 = vld [vmem:[%s3806_s1 + $0x2f8] ss:$20 sps:$4 sm:$0xff]   ;;  %v2747_v21 = vld [vmem:[%s3806_s1 + $0x2d4] ss:$20 sps:$4 sm:$0xff]   ;;  %v2750_v23 = vld [vmem:[%s3806_s1 + $0x2d0] ss:$20 sps:$4 sm:$0xff]  }
  0x13   : > { %1422 = vmatprep.subr.bf16.mxu1 %v2729_v9  ;;  %v2751_v24 = vld [vmem:[%s3806_s1 + $0x2c] ss:$20 sps:$4 sm:$0xff]   ;;  %v2755_v26 = vld [vmem:[%s3806_s1 + $0x28] ss:$20 sps:$4 sm:$0xff]   ;;  %v2757_v28 = vld [vmem:[%s3806_s1 + $0x4] ss:$20 sps:$4 sm:$0xff]  }
  0x14   : > { %v2753_v25 = vld [vmem:[%s3806_s1 + $0x2ac] ss:$20 sps:$4 sm:$0xff]   ;;  %v2756_v27 = vld [vmem:[%s3806_s1 + $0x2a8] ss:$20 sps:$4 sm:$0xff]   ;;  %v2759_v29 = vld [vmem:[%s3806_s1 + $0x284] ss:$20 sps:$4 sm:$0xff]  }
  0x15   : > { %1360 = vmatpush1.bf16.msra.mxu0 %v2731_v10  ;;  %v2761_v30 = vld [vmem:[%s3806_s1] ss:$20 sps:$4 sm:$0xff]   ;;  %v2763_v32 = vld [vmem:[%s3806_s1 + $0x25c] ss:$20 sps:$4 sm:$0xff]   ;;  %v2767_v34 = vld [vmem:[%s3806_s1 + $0x258] ss:$20 sps:$4 sm:$0xff]  }
  0x16   : > { %1423 = vmatpush1.bf16.msra.mxu1 %v2732_v11  ;;  %1361 = vmatprep.subr.bf16.mxu0 %v2733_v12  ;;  %v2762_v31 = vld [vmem:[%s3806_s1 + $0x280] ss:$20 sps:$4 sm:$0xff]   ;;  %v2765_v33 = vld [vmem:[%s3806_s1 + $0x4dc] ss:$20 sps:$4 sm:$0xff]   ;;  %v2768_v35 = vld [vmem:[%s3806_s1 + $0x4d8] ss:$20 sps:$4 sm:$0xff]  }
  0x17   : > { %1424 = vmatprep.subr.bf16.mxu1 %v2735_v13  ;;  %v2769_v36 = vld [vmem:[%s3806_s1 + $0x234] ss:$20 sps:$4 sm:$0xff]   ;;  %s3812_s9 = smov (!%p219_p3, %s218_s9), 11  ;;  %v2773_v38 = vld [vmem:[%s3806_s1 + $0x230] ss:$20 sps:$4 sm:$0xff]   ;;  %vm3014_vm0 = vmmov 0  }
  0x18   : > { %v2771_v37 = vld [vmem:[%s3806_s1 + $0x4b4] ss:$20 sps:$4 sm:$0xff]   ;;  %v2774_v39 = vld [vmem:[%s3806_s1 + $0x4b0] ss:$20 sps:$4 sm:$0xff]   ;;  %v2775_v40 = vld [vmem:[%s3806_s1 + $0x20c] ss:$20 sps:$4 sm:$0xff]  }
  0x19   : > { %1362 = vmatpush1.bf16.msra.mxu0 %v2737_v14  ;;  %v2777_v41 = vld [vmem:[%s3806_s1 + $0x48c] ss:$20 sps:$4 sm:$0xff]   ;;  %s2533_s11 = sshll.u32 %s3812_s9, 4  ;;  %v2779_v42 = vld [vmem:[%s3806_s1 + $0x208] ss:$20 sps:$4 sm:$0xff]   ;;  %vm2061_vm1 = vcmask 523264  }
  0x1a   : > { %1425 = vmatpush1.bf16.msra.mxu1 %v2738_v15  ;;  %1363 = vmatprep.subr.bf16.mxu0 %v2739_v16  ;;  %v2780_v43 = vld [vmem:[%s3806_s1 + $0x488] ss:$20 sps:$4 sm:$0xff]   ;;  %v2781_v44 = vld [vmem:[%s3806_s1 + $0x1e4] ss:$20 sps:$4 sm:$0xff]   ;;  %s3196_s21 = scalar_lea.vmem %s3805_s0, %s2533_s11  ;;  %v2785_v46 = vld [vmem:[%s3806_s1 + $0x1e0] ss:$20 sps:$4 sm:$0xff]  }
  0x1b   : > { %1426 = vmatprep.subr.bf16.mxu1 %v2741_v17  ;;  %v2783_v45 = vld [vmem:[%s3806_s1 + $0x464] ss:$20 sps:$4 sm:$0xff]   ;;  %v2786_v47 = vld [vmem:[%s3806_s1 + $0x460] ss:$20 sps:$4 sm:$0xff]   ;;  %v2787_v49 = vld [vmem:[%s3806_s1 + $0x1bc] ss:$20 sps:$4 sm:$0xff]  }
  0x1c   : > { %v3208_v48 = vld [vmem:[%s3196_s21 + $0x4] ss:$16 sps:$4 sm:$0xff]   ;;  %v3214_v50 = vld [vmem:[%s3196_s21 + $0xc] ss:$16 sps:$4 sm:$0xff]   ;;  %v3270_v4 = vld [vmem:[%s3196_s21] ss:$16 sps:$4 sm:$0xff]  }
  0x1d   : > { %1364 = vmatpush1.bf16.msra.mxu0 %v2743_v18  ;;  %v2789_v51 = vld [vmem:[%s3806_s1 + $0x43c] ss:$20 sps:$4 sm:$0xff]   ;;  %1387 = vmatprep.mubr.bf16.mxu0 %v3208_v48  ;;  %v2791_v52 = vld [vmem:[%s3806_s1 + $0x1b8] ss:$20 sps:$4 sm:$0xff]   ;;  %v2793_v54 = vld [vmem:[%s3806_s1 + $0x194] ss:$20 sps:$4 sm:$0xff]  }
  0x1e   : > { %1427 = vmatpush1.bf16.msra.mxu1 %v2744_v19  ;;  %1365 = vmatprep.subr.bf16.mxu0 %v2745_v20  ;;  %v2792_v53 = vld [vmem:[%s3806_s1 + $0x438] ss:$20 sps:$4 sm:$0xff]   ;;  %v2795_v55 = vld [vmem:[%s3806_s1 + $0x414] ss:$20 sps:$4 sm:$0xff]   ;;  %v2797_v56 = vld [vmem:[%s3806_s1 + $0x190] ss:$20 sps:$4 sm:$0xff]  }
  0x1f   : > { %1428 = vmatprep.subr.bf16.mxu1 %v2747_v21  ;;  %1450 = vmatprep.mubr.bf16.mxu1 %v3214_v50  ;;  %v2798_v57 = vld [vmem:[%s3806_s1 + $0x410] ss:$20 sps:$4 sm:$0xff]   ;;  %v2799_v58 = vld [vmem:[%s3806_s1 + $0x16c] ss:$20 sps:$4 sm:$0xff]   ;;  %v2803_v60 = vld [vmem:[%s3806_s1 + $0x168] ss:$20 sps:$4 sm:$0xff]  }
  0x20   : > { %v2801_v59 = vld [vmem:[%s3806_s1 + $0x3ec] ss:$20 sps:$4 sm:$0xff]   ;;  %v2804_v61 = vld [vmem:[%s3806_s1 + $0x3e8] ss:$20 sps:$4 sm:$0xff]   ;;  %v2805_v62 = vld [vmem:[%s3806_s1 + $0x144] ss:$20 sps:$4 sm:$0xff]  }
  0x21   : > { %1366 = vmatpush1.bf16.msra.mxu0 %v2749_v22  ;;  %v2807_v63 = vld [vmem:[%s3806_s1 + $0x3c4] ss:$20 sps:$4 sm:$0xff]   ;;  %v2809_v0 = vld [vmem:[%s3806_s1 + $0x140] ss:$20 sps:$4 sm:$0xff]   ;;  %v2825_v8 = vld [vmem:[%s3806_s1 + $0xfc] ss:$20 sps:$4 sm:$0xff]  }
  0x22   : > { %1429 = vmatpush1.bf16.msra.mxu1 %v2750_v23  ;;  %1367 = vmatprep.subr.bf16.mxu0 %v2751_v24  ;;  %v2810_v1 = vld [vmem:[%s3806_s1 + $0x3c0] ss:$20 sps:$4 sm:$0xff]   ;;  %v2819_v2 = vld [vmem:[%s3806_s1 + $0x124] ss:$20 sps:$4 sm:$0xff]   ;;  %v2828_v9 = vld [vmem:[%s3806_s1 + $0x37c] ss:$20 sps:$4 sm:$0xff]  }
  0x23   : > { %1430 = vmatprep.subr.bf16.mxu1 %v2753_v25  ;;  %v2822_v3 = vld [vmem:[%s3806_s1 + $0x3a4] ss:$20 sps:$4 sm:$0xff]   ;;  %v2817_v6 = vld [vmem:[%s3806_s1 + $0x120] ss:$20 sps:$4 sm:$0xff]   ;;  %v2835_v20 = vld [vmem:[%s3806_s1 + $0xa8] ss:$20 sps:$4 sm:$0xff]  }
  0x24   : > { %v3273_v5 = vld [vmem:[%s3196_s21 + $0x8] ss:$16 sps:$4 sm:$0xff]   ;;  %v2820_v7 = vld [vmem:[%s3806_s1 + $0x3a0] ss:$20 sps:$4 sm:$0xff]   ;;  %v2829_v14 = vld [vmem:[%s3806_s1 + $0xd0] ss:$20 sps:$4 sm:$0xff]  }
  0x25   : > { %1368 = vmatpush1.bf16.msra.mxu0 %v2755_v26  ;;  %v2823_v10 = vld [vmem:[%s3806_s1 + $0xf8] ss:$20 sps:$4 sm:$0xff]   ;;  %v2831_v12 = vld [vmem:[%s3806_s1 + $0xd4] ss:$20 sps:$4 sm:$0xff]   ;;  %v2832_v16 = vld [vmem:[%s3806_s1 + $0x350] ss:$20 sps:$4 sm:$0xff]  }
  0x26   : > { %1431 = vmatpush1.bf16.msra.mxu1 %v2756_v27  ;;  %1369 = vmatprep.subr.bf16.mxu0 %v2757_v28  ;;  %v2826_v11 = vld [vmem:[%s3806_s1 + $0x378] ss:$20 sps:$4 sm:$0xff]   ;;  %v2834_v13 = vld [vmem:[%s3806_s1 + $0x354] ss:$20 sps:$4 sm:$0xff]   ;;  %v3311_v17 = vld [vmem:[%s3196_s21 + $0x20] ss:$16 sps:$4 sm:$0xff]  }
  0x27   : > { %1432 = vmatprep.subr.bf16.mxu1 %v2759_v29  ;;  %v3305_v15 = vld [vmem:[%s3196_s21 + $0x24] ss:$16 sps:$4 sm:$0xff]   ;;  %v2837_v18 = vld [vmem:[%s3806_s1 + $0xac] ss:$20 sps:$4 sm:$0xff]   ;;  %v2838_v22 = vld [vmem:[%s3806_s1 + $0x328] ss:$20 sps:$4 sm:$0xff]  }
  0x28   : > { %v2840_v19 = vld [vmem:[%s3806_s1 + $0x32c] ss:$20 sps:$4 sm:$0xff]   ;;  %v3331_v23 = vld [vmem:[%s3196_s21 + $0x28] ss:$16 sps:$4 sm:$0xff]   ;;  %v3344_v27 = vld [vmem:[%s3196_s21 + $0x44] ss:$16 sps:$4 sm:$0xff]  }
  0x29   : > { %1370 = vmatpush1.bf16.msra.mxu0 %v2761_v30  ;;  %v3324_v21 = vld [vmem:[%s3196_s21 + $0x2c] ss:$16 sps:$4 sm:$0xff]   ;;  %v2843_v24 = vld [vmem:[%s3806_s1 + $0x84] ss:$20 sps:$4 sm:$0xff]   ;;  %v2841_v26 = vld [vmem:[%s3806_s1 + $0x80] ss:$20 sps:$4 sm:$0xff]  }
  0x2a   : > { %1433 = vmatpush1.bf16.msra.mxu1 %v2762_v31  ;;  %1371 = vmatprep.subr.bf16.mxu0 %v2763_v32  ;;  %v2846_v25 = vld [vmem:[%s3806_s1 + $0x304] ss:$20 sps:$4 sm:$0xff]   ;;  %v2844_v28 = vld [vmem:[%s3806_s1 + $0x300] ss:$20 sps:$4 sm:$0xff]   ;;  %v2849_v30 = vld [vmem:[%s3806_s1 + $0x5c] ss:$20 sps:$4 sm:$0xff]  }
  0x2b   : > { %1434 = vmatprep.subr.bf16.mxu1 %v2765_v33  ;;  %v3351_v29 = vld [vmem:[%s3196_s21 + $0x40] ss:$16 sps:$4 sm:$0xff]   ;;  %v2847_v32 = vld [vmem:[%s3806_s1 + $0x58] ss:$20 sps:$4 sm:$0xff]   ;;  %s2318_s7 = sshll.u32 %s3812_s9, 3  ;;  %vm2248_vm2 = vcmask 293888  }
  0x2c   : > { %v2852_v31 = vld [vmem:[%s3806_s1 + $0x2dc] ss:$20 sps:$4 sm:$0xff]   ;;  %s229_s11 = scalar_lea.vmem %s3810_s5, %s2318_s7 }
  0x2d   : > { %1372 = vmatpush2.bf16.msra.mxu0 %v2767_v34  ;;  %v3364_v33 = vld [vmem:[%s3196_s21 + $0x4c] ss:$16 sps:$4 sm:$0xff]  }
  0x2e   : > { %1435 = vmatpush2.bf16.msra.mxu1 %v2768_v35  ;;  %1373 = vmatprep.subr.bf16.mxu0 %v2769_v36  ;;  %v2850_v34 = vld [vmem:[%s3806_s1 + $0x2d8] ss:$20 sps:$4 sm:$0xff]   ;;  %v2855_v36 = vld [vmem:[%s3806_s1 + $0x34] ss:$20 sps:$4 sm:$0xff]  }
  0x2f   : > { %1436 = vmatprep.subr.bf16.mxu1 %v2771_v37  ;;  %v3371_v35 = vld [vmem:[%s3196_s21 + $0x48] ss:$16 sps:$4 sm:$0xff]  }
  0x30   : > { %v2858_v37 = vld [vmem:[%s3806_s1 + $0x2b4] ss:$20 sps:$4 sm:$0xff]  }
  0x31   : > { %1374 = vmatpush2.bf16.msra.mxu0 %v2773_v38  ;;  %v2853_v38 = vld [vmem:[%s3806_s1 + $0x30] ss:$20 sps:$4 sm:$0xff]  }
  0x32   : > { %1437 = vmatpush2.bf16.msra.mxu1 %v2774_v39  ;;  %1375 = vmatprep.subr.bf16.mxu0 %v2775_v40  ;;  %v2856_v39 = vld [vmem:[%s3806_s1 + $0x2b0] ss:$20 sps:$4 sm:$0xff]   ;;  %v2861_v40 = vld [vmem:[%s3806_s1 + $0xc] ss:$20 sps:$4 sm:$0xff]  }
  0x33   : > { %1438 = vmatprep.subr.bf16.mxu1 %v2777_v41  ;;  %v2864_v41 = vld [vmem:[%s3806_s1 + $0x28c] ss:$20 sps:$4 sm:$0xff]  }
  0x35   : > { %1376 = vmatpush2.bf16.msra.mxu0 %v2779_v42  ;;  %v2859_v42 = vld [vmem:[%s3806_s1 + $0x8] ss:$20 sps:$4 sm:$0xff]  }
  0x36   : > { %1439 = vmatpush2.bf16.msra.mxu1 %v2780_v43  ;;  %1377 = vmatprep.subr.bf16.mxu0 %v2781_v44  ;;  %v2862_v43 = vld [vmem:[%s3806_s1 + $0x288] ss:$20 sps:$4 sm:$0xff]   ;;  %v2867_v44 = vld [vmem:[%s3806_s1 + $0x264] ss:$20 sps:$4 sm:$0xff]  }
  0x37   : > { %1440 = vmatprep.subr.bf16.mxu1 %v2783_v45  ;;  %v2870_v45 = vld [vmem:[%s3806_s1 + $0x4e4] ss:$20 sps:$4 sm:$0xff]  }
  0x39   : > { %1378 = vmatpush2.bf16.msra.mxu0 %v2785_v46  ;;  %v2865_v46 = vld [vmem:[%s3806_s1 + $0x260] ss:$20 sps:$4 sm:$0xff]  }
  0x3a   : > { %1441 = vmatpush2.bf16.msra.mxu1 %v2786_v47  ;;  %1379 = vmatprep.subr.bf16.mxu0 %v2787_v49  ;;  %v2868_v47 = vld [vmem:[%s3806_s1 + $0x4e0] ss:$20 sps:$4 sm:$0xff]   ;;  %v2876_v49 = vld [vmem:[%s3806_s1 + $0x23c] ss:$20 sps:$4 sm:$0xff]  }
  0x3b   : > { %1442 = vmatprep.subr.bf16.mxu1 %v2789_v51  ;;  %v2879_v51 = vld [vmem:[%s3806_s1 + $0x4bc] ss:$20 sps:$4 sm:$0xff]  }
  0x3d   : > { %1380 = vmatpush2.bf16.msra.mxu0 %v2791_v52  ;;  %v2874_v52 = vld [vmem:[%s3806_s1 + $0x238] ss:$20 sps:$4 sm:$0xff]  }
  0x3e   : > { %1443 = vmatpush2.bf16.msra.mxu1 %v2792_v53  ;;  %1381 = vmatprep.subr.bf16.mxu0 %v2793_v54  ;;  %v2877_v53 = vld [vmem:[%s3806_s1 + $0x4b8] ss:$20 sps:$4 sm:$0xff]   ;;  %v2885_v54 = vld [vmem:[%s3806_s1 + $0x214] ss:$20 sps:$4 sm:$0xff]  }
  0x3f   : > { %1444 = vmatprep.subr.bf16.mxu1 %v2795_v55  ;;  %v2888_v55 = vld [vmem:[%s3806_s1 + $0x494] ss:$20 sps:$4 sm:$0xff]  }
  0x41   : > { %1382 = vmatpush2.bf16.msra.mxu0 %v2797_v56  ;;  %v2883_v56 = vld [vmem:[%s3806_s1 + $0x210] ss:$20 sps:$4 sm:$0xff]  }
  0x42   : > { %1445 = vmatpush2.bf16.msra.mxu1 %v2798_v57  ;;  %1383 = vmatprep.subr.bf16.mxu0 %v2799_v58  ;;  %v2886_v57 = vld [vmem:[%s3806_s1 + $0x490] ss:$20 sps:$4 sm:$0xff]   ;;  %v2894_v58 = vld [vmem:[%s3806_s1 + $0x1ec] ss:$20 sps:$4 sm:$0xff]  }
  0x43   : > { %1446 = vmatprep.subr.bf16.mxu1 %v2801_v59  ;;  %v2897_v59 = vld [vmem:[%s3806_s1 + $0x46c] ss:$20 sps:$4 sm:$0xff]  }
  0x45   : > { %1384 = vmatpush2.bf16.msra.mxu0 %v2803_v60  ;;  %v2892_v60 = vld [vmem:[%s3806_s1 + $0x1e8] ss:$20 sps:$4 sm:$0xff]  }
  0x46   : > { %1447 = vmatpush2.bf16.msra.mxu1 %v2804_v61  ;;  %1385 = vmatprep.subr.bf16.mxu0 %v2805_v62  ;;  %v2895_v61 = vld [vmem:[%s3806_s1 + $0x468] ss:$20 sps:$4 sm:$0xff]   ;;  %v2903_v62 = vld [vmem:[%s3806_s1 + $0x1c4] ss:$20 sps:$4 sm:$0xff]  }
  0x47   : > { %1448 = vmatprep.subr.bf16.mxu1 %v2807_v63  ;;  %v2906_v63 = vld [vmem:[%s3806_s1 + $0x444] ss:$20 sps:$4 sm:$0xff]  }
  0x49   : > { %1386 = vmatpush2.bf16.msra.mxu0 %v2809_v0  ;;  %v2901_v0 = vld [vmem:[%s3806_s1 + $0x1c0] ss:$20 sps:$4 sm:$0xff]  }
  0x4a   : > { %1449 = vmatpush2.bf16.msra.mxu1 %v2810_v1  ;;  %1481 = vmatprep.subr.bf16.mxu0 %v2819_v2  ;;  %v2904_v1 = vld [vmem:[%s3806_s1 + $0x440] ss:$20 sps:$4 sm:$0xff]   ;;  %v2909_v2 = vld [vmem:[%s3806_s1 + $0x19c] ss:$20 sps:$4 sm:$0xff]  }
  0x4b   : > { %1544 = vmatprep.subr.bf16.mxu1 %v2822_v3  ;;  %v2912_v3 = vld [vmem:[%s3806_s1 + $0x41c] ss:$20 sps:$4 sm:$0xff]  }
  0x4c   : > { %1388 = vmatmul.mubr.bf16.vlgmr.msra.gmra.mxu0 %v3270_v4 }
  0x4d   : > { %1451 = vmatmul.mubr.bf16.vlgmr.msra.gmra.mxu1 %v3273_v5  ;;  %1482 = vmatpush1.bf16.msra.mxu0 %v2817_v6  ;;  %v2907_v6 = vld [vmem:[%s3806_s1 + $0x198] ss:$20 sps:$4 sm:$0xff]  }
  0x4e   : > { %1545 = vmatpush1.bf16.msra.mxu1 %v2820_v7  ;;  %1483 = vmatprep.subr.bf16.mxu0 %v2825_v8  ;;  %v2910_v7 = vld [vmem:[%s3806_s1 + $0x418] ss:$20 sps:$4 sm:$0xff]   ;;  %v2915_v8 = vld [vmem:[%s3806_s1 + $0x174] ss:$20 sps:$4 sm:$0xff]  }
  0x4f   : > { %1546 = vmatprep.subr.bf16.mxu1 %v2828_v9  ;;  %1397 = vmatprep.mubr.bf16.mxu0 %v3305_v15  ;;  %v2918_v9 = vld [vmem:[%s3806_s1 + $0x3f4] ss:$20 sps:$4 sm:$0xff]  }
  0x50   : > { %1460 = vmatprep.mubr.bf16.mxu1 %v3324_v21 }
  0x51   : > { %1484 = vmatpush1.bf16.msra.mxu0 %v2823_v10  ;;  %v2913_v10 = vld [vmem:[%s3806_s1 + $0x170] ss:$20 sps:$4 sm:$0xff]  }
  0x52   : > { %1547 = vmatpush1.bf16.msra.mxu1 %v2826_v11  ;;  %1485 = vmatprep.subr.bf16.mxu0 %v2831_v12  ;;  %v2916_v11 = vld [vmem:[%s3806_s1 + $0x3f0] ss:$20 sps:$4 sm:$0xff]   ;;  %v2921_v12 = vld [vmem:[%s3806_s1 + $0x14c] ss:$20 sps:$4 sm:$0xff]  }
  0x53   : > { %1548 = vmatprep.subr.bf16.mxu1 %v2834_v13  ;;  %v2924_v13 = vld [vmem:[%s3806_s1 + $0x3cc] ss:$20 sps:$4 sm:$0xff]  }
  0x54   : > { %1398 = vmatmul.mubr.bf16.gmra.mxu0 %v3311_v17 }
  0x55   : > { %1486 = vmatpush1.bf16.msra.mxu0 %v2829_v14  ;;  %1461 = vmatmul.mubr.bf16.gmra.mxu1 %v3331_v23  ;;  %v2919_v14 = vld [vmem:[%s3806_s1 + $0x148] ss:$20 sps:$4 sm:$0xff]  }
  0x56   : > { %1549 = vmatpush1.bf16.msra.mxu1 %v2832_v16  ;;  %1487 = vmatprep.subr.bf16.mxu0 %v2837_v18  ;;  %v2922_v16 = vld [vmem:[%s3806_s1 + $0x3c8] ss:$20 sps:$4 sm:$0xff]  }
  0x57   : > { %1550 = vmatprep.subr.bf16.mxu1 %v2840_v19  ;;  %1407 = vmatprep.mubr.bf16.mxu0 %v3344_v27  ;;  %v2925_v18 = vld [vmem:[%s3806_s1 + $0x268] ss:$20 sps:$4 sm:$0xff]  }
  0x58   : > { %1470 = vmatprep.mubr.bf16.mxu1 %v3364_v33  ;;  %v2926_v19 = vld [vmem:[%s3806_s1 + $0x4e8] ss:$20 sps:$4 sm:$0xff]  }
  0x59   : > { %1488 = vmatpush1.bf16.msra.mxu0 %v2835_v20  ;;  %v2927_v20 = vld [vmem:[%s3806_s1 + $0x128] ss:$20 sps:$4 sm:$0xff]  }
  0x5a   : > { %1551 = vmatpush1.bf16.msra.mxu1 %v2838_v22  ;;  %1489 = vmatprep.subr.bf16.mxu0 %v2843_v24  ;;  %v2928_v22 = vld [vmem:[%s3806_s1 + $0x3a8] ss:$20 sps:$4 sm:$0xff]   ;;  %v2929_v24 = vld [vmem:[%s3806_s1 + $0x240] ss:$20 sps:$4 sm:$0xff]  }
  0x5b   : > { %1552 = vmatprep.subr.bf16.mxu1 %v2846_v25  ;;  %v2930_v25 = vld [vmem:[%s3806_s1 + $0x4c0] ss:$20 sps:$4 sm:$0xff]  }
  0x5c   : > { %1408 = vmatmul.mubr.bf16.gmra.mxu0 %v3351_v29 }
  0x5d   : > { %1490 = vmatpush1.bf16.msra.mxu0 %v2841_v26  ;;  %1513 = vmatprep.mubr.bf16.mxu0 %v3208_v48  ;;  %v2931_v26 = vld [vmem:[%s3806_s1 + $0x100] ss:$20 sps:$4 sm:$0xff]  }
  0x5e   : > { %1553 = vmatpush1.bf16.msra.mxu1 %v2844_v28  ;;  %1491 = vmatprep.subr.bf16.mxu0 %v2849_v30  ;;  %v2932_v28 = vld [vmem:[%s3806_s1 + $0x380] ss:$20 sps:$4 sm:$0xff]   ;;  %v2933_v30 = vld [vmem:[%s3806_s1 + $0x218] ss:$20 sps:$4 sm:$0xff]  }
  0x5f   : > { %1554 = vmatprep.subr.bf16.mxu1 %v2852_v31  ;;  %1471 = vmatmul.mubr.bf16.gmra.mxu1 %v3371_v35  ;;  %v2934_v31 = vld [vmem:[%s3806_s1 + $0x498] ss:$20 sps:$4 sm:$0xff]  }
  0x60   : > { %1576 = vmatprep.mubr.bf16.mxu1 %v3214_v50 }
  0x61   : > { %1492 = vmatpush1.bf16.msra.mxu0 %v2847_v32  ;;  %v2935_v32 = vld [vmem:[%s3806_s1 + $0xd8] ss:$20 sps:$4 sm:$0xff]  }
  0x62   : > { %1555 = vmatpush1.bf16.msra.mxu1 %v2850_v34  ;;  %1493 = vmatprep.subr.bf16.mxu0 %v2855_v36  ;;  %v2936_v34 = vld [vmem:[%s3806_s1 + $0x358] ss:$20 sps:$4 sm:$0xff]   ;;  %v2937_v36 = vld [vmem:[%s3806_s1 + $0x1f0] ss:$20 sps:$4 sm:$0xff]  }
  0x63   : > { %1556 = vmatprep.subr.bf16.mxu1 %v2858_v37  ;;  %v2938_v37 = vld [vmem:[%s3806_s1 + $0x470] ss:$20 sps:$4 sm:$0xff]  }
  0x65   : > { %1494 = vmatpush1.bf16.msra.mxu0 %v2853_v38  ;;  %v2939_v38 = vld [vmem:[%s3806_s1 + $0xb0] ss:$20 sps:$4 sm:$0xff]  }
  0x66   : > { %1557 = vmatpush1.bf16.msra.mxu1 %v2856_v39  ;;  %1495 = vmatprep.subr.bf16.mxu0 %v2861_v40  ;;  %v2940_v39 = vld [vmem:[%s3806_s1 + $0x330] ss:$20 sps:$4 sm:$0xff]   ;;  %v2941_v40 = vld [vmem:[%s3806_s1 + $0x1c8] ss:$20 sps:$4 sm:$0xff]  }
  0x67   : > { %1558 = vmatprep.subr.bf16.mxu1 %v2864_v41  ;;  %v2942_v41 = vld [vmem:[%s3806_s1 + $0x448] ss:$20 sps:$4 sm:$0xff]  }
  0x69   : > { %1496 = vmatpush1.bf16.msra.mxu0 %v2859_v42  ;;  %v2943_v42 = vld [vmem:[%s3806_s1 + $0x88] ss:$20 sps:$4 sm:$0xff]  }
  0x6a   : > { %1559 = vmatpush1.bf16.msra.mxu1 %v2862_v43  ;;  %1497 = vmatprep.subr.bf16.mxu0 %v2867_v44  ;;  %v2944_v43 = vld [vmem:[%s3806_s1 + $0x308] ss:$20 sps:$4 sm:$0xff]   ;;  %v2945_v44 = vld [vmem:[%s3806_s1 + $0x1a0] ss:$20 sps:$4 sm:$0xff]  }
  0x6b   : > { %1560 = vmatprep.subr.bf16.mxu1 %v2870_v45  ;;  %v2946_v45 = vld [vmem:[%s3806_s1 + $0x420] ss:$20 sps:$4 sm:$0xff]  }
  0x6d   : > { %1498 = vmatpush2.bf16.msra.mxu0 %v2865_v46  ;;  %v2947_v46 = vld [vmem:[%s3806_s1 + $0x60] ss:$20 sps:$4 sm:$0xff]  }
  0x6e   : > { %1561 = vmatpush2.bf16.msra.mxu1 %v2868_v47  ;;  %1499 = vmatprep.subr.bf16.mxu0 %v2876_v49  ;;  %v2948_v47 = vld [vmem:[%s3806_s1 + $0x2e0] ss:$20 sps:$4 sm:$0xff]   ;;  %v2949_v49 = vld [vmem:[%s3806_s1 + $0x178] ss:$20 sps:$4 sm:$0xff]  }
  0x6f   : > { %1562 = vmatprep.subr.bf16.mxu1 %v2879_v51  ;;  %v2950_v51 = vld [vmem:[%s3806_s1 + $0x3f8] ss:$20 sps:$4 sm:$0xff]  }
  0x71   : > { %1500 = vmatpush2.bf16.msra.mxu0 %v2874_v52  ;;  %v2951_v52 = vld [vmem:[%s3806_s1 + $0x38] ss:$20 sps:$4 sm:$0xff]  }
  0x72   : > { %1563 = vmatpush2.bf16.msra.mxu1 %v2877_v53  ;;  %1501 = vmatprep.subr.bf16.mxu0 %v2885_v54  ;;  %v2952_v53 = vld [vmem:[%s3806_s1 + $0x2b8] ss:$20 sps:$4 sm:$0xff]   ;;  %v2953_v54 = vld [vmem:[%s3806_s1 + $0x150] ss:$20 sps:$4 sm:$0xff]  }
  0x73   : > { %1564 = vmatprep.subr.bf16.mxu1 %v2888_v55  ;;  %v2954_v55 = vld [vmem:[%s3806_s1 + $0x3d0] ss:$20 sps:$4 sm:$0xff]  }
  0x75   : > { %1502 = vmatpush2.bf16.msra.mxu0 %v2883_v56  ;;  %v2957_v56 = vld [vmem:[%s3808_s3 + $0x78] sm:$0xff]  }
  0x76   : > { %1565 = vmatpush2.bf16.msra.mxu1 %v2886_v57  ;;  %1503 = vmatprep.subr.bf16.mxu0 %v2894_v58  ;;  %v2973_v57 = vld [vmem:[%s3808_s3 + $0xf8] sm:$0xff]  }
  0x77   : > { %1566 = vmatprep.subr.bf16.mxu1 %v2897_v59  ;;  %v2958_v58 = vld [vmem:[%s3808_s3 + $0x38] sm:$0xff]  }
  0x78   : > { %v2974_v59 = vld [vmem:[%s3808_s3 + $0xb8] sm:$0xff]  }
  0x79   : > { %1504 = vmatpush2.bf16.msra.mxu0 %v2892_v60  ;;  %v2959_v60 = vld [vmem:[%s3808_s3 + $0x70] sm:$0xff]  }
  0x7a   : > { %1567 = vmatpush2.bf16.msra.mxu1 %v2895_v61  ;;  %1505 = vmatprep.subr.bf16.mxu0 %v2903_v62  ;;  %v2975_v61 = vld [vmem:[%s3808_s3 + $0xf0] sm:$0xff]  }
  0x7b   : > { %1568 = vmatprep.subr.bf16.mxu1 %v2906_v63  ;;  %v2960_v62 = vld [vmem:[%s3808_s3 + $0x30] sm:$0xff]  }
  0x7c   : > { %v2976_v63 = vld [vmem:[%s3808_s3 + $0xb0] sm:$0xff]  }
  0x7d   : > { %1506 = vmatpush2.bf16.msra.mxu0 %v2901_v0  ;;  %v2963_v0 = vld [vmem:[%s3808_s3 + $0x60] sm:$0xff]  }
  0x7e   : > { %1569 = vmatpush2.bf16.msra.mxu1 %v2904_v1  ;;  %1507 = vmatprep.subr.bf16.mxu0 %v2909_v2  ;;  %v2979_v1 = vld [vmem:[%s3808_s3 + $0xe0] sm:$0xff]  }
  0x7f   : > { %1570 = vmatprep.subr.bf16.mxu1 %v2912_v3  ;;  %v2964_v2 = vld [vmem:[%s3808_s3 + $0x20] sm:$0xff]  }
  0x80   : > { %v2980_v3 = vld [vmem:[%s3808_s3 + $0xa0] sm:$0xff]  }
  0x81   : > { %1508 = vmatpush2.bf16.msra.mxu0 %v2907_v6  ;;  %v2969_v6 = vld [vmem:[%s3808_s3 + $0x48] sm:$0xff]  }
  0x82   : > { %1571 = vmatpush2.bf16.msra.mxu1 %v2910_v7  ;;  %1509 = vmatprep.subr.bf16.mxu0 %v2915_v8  ;;  %v2970_v7 = vld [vmem:[%s3808_s3 + $0x8] sm:$0xff]   ;;  %v2981_v8 = vld [vmem:[%s3808_s3 + $0xd8] sm:$0xff]  }
  0x83   : > { %1572 = vmatprep.subr.bf16.mxu1 %v2918_v9  ;;  %v2982_v9 = vld [vmem:[%s3808_s3 + $0x98] sm:$0xff]  }
  0x85   : > { %1510 = vmatpush2.bf16.msra.mxu0 %v2913_v10  ;;  %v2983_v10 = vld [vmem:[%s3808_s3 + $0xd0] sm:$0xff]  }
  0x86   : > { %1573 = vmatpush2.bf16.msra.mxu1 %v2916_v11  ;;  %1511 = vmatprep.subr.bf16.mxu0 %v2921_v12  ;;  %v2984_v11 = vld [vmem:[%s3808_s3 + $0x90] sm:$0xff]   ;;  %v2985_v12 = vld [vmem:[%s3808_s3 + $0xc8] sm:$0xff]  }
  0x87   : > { %1574 = vmatprep.subr.bf16.mxu1 %v2924_v13  ;;  %v2986_v13 = vld [vmem:[%s3808_s3 + $0x88] sm:$0xff]  }
  0x89   : > { %1512 = vmatpush2.bf16.msra.mxu0 %v2919_v14  ;;  %v2987_v14 = vld [vmem:[%s3808_s3 + $0xc0] sm:$0xff]  }
  0x8a   : > { %1575 = vmatpush2.bf16.msra.mxu1 %v2922_v16  ;;  %2534 = vmatprep.subr.bf16.mxu0 %v2925_v18  ;;  %v2988_v16 = vld [vmem:[%s3808_s3 + $0x80] sm:$0xff]   ;;  %v3013_v18 = vmov 0.0  }
  0x8b   : > { %2568 = vmatprep.subr.bf16.mxu1 %v2926_v19  ;;  %v438_v19 = vlaneseq }
  0x8c   : > { %1514 = vmatmul.mubr.bf16.vlgmr.msra.gmra.mxu0 %v3270_v4 }
  0x8d   : > { %1577 = vmatmul.mubr.bf16.vlgmr.msra.gmra.mxu1 %v3273_v5  ;;  %2535 = vmatpush3.bf16.msra.mxu0 %v2927_v20  ;;  %v3713_v20 = vshrl.u32 %v438_v19, 7 }
  0x8e   : > { %2569 = vmatpush3.bf16.msra.mxu1 %v2928_v22  ;;  %2536 = vmatprep.subr.bf16.mxu0 %v2929_v24  ;;  %v3719_v24 = vld [vmem:[%s3807_s2] sm:$0x1f] }
  0x8f   : > { %2570 = vmatprep.subr.bf16.mxu1 %v2930_v25  ;;  %1523 = vmatprep.mubr.bf16.mxu0 %v3305_v15  ;;  %v444_v22 = vsub.s32 1, %v3713_v20  ;;  %v440_v25 = vsub.s32 0, %v3713_v20 }
  0x90   : > { %1586 = vmatprep.mubr.bf16.mxu1 %v3324_v21 }
  0x91   : > { %2537 = vmatpush3.bf16.msra.mxu0 %v2931_v26  ;;  %v3723_v26 = vrot.slane %v3719_v24, %v444_v22 }
  0x92   : > { %2571 = vmatpush3.bf16.msra.mxu1 %v2932_v28  ;;  %2538 = vmatprep.subr.bf16.mxu0 %v2933_v30  ;;  %v441_v28 = vrot.slane %v3719_v24, %v440_v25 }
  0x93   : > { %2572 = vmatprep.subr.bf16.mxu1 %v2934_v31 }
  0x94   : > { %1524 = vmatmul.mubr.bf16.gmra.mxu0 %v3311_v17 }
  0x95   : > { %1587 = vmatmul.mubr.bf16.gmra.mxu1 %v3331_v23  ;;  %2539 = vmatpush3.bf16.msra.mxu0 %v2935_v32 }
  0x96   : > { %2573 = vmatpush3.bf16.msra.mxu1 %v2936_v34  ;;  %2540 = vmatprep.subr.bf16.mxu0 %v2937_v36 }
  0x97   : > { %2574 = vmatprep.subr.bf16.mxu1 %v2938_v37  ;;  %1533 = vmatprep.mubr.bf16.mxu0 %v3344_v27 }
  0x98   : > { %1596 = vmatprep.mubr.bf16.mxu1 %v3364_v33 }
  0x99   : > { %2541 = vmatpush3.bf16.msra.mxu0 %v2939_v38 }
  0x9a   : > { %2575 = vmatpush3.bf16.msra.mxu1 %v2940_v39  ;;  %2542 = vmatprep.subr.bf16.mxu0 %v2941_v40 }
  0x9b   : > { %2576 = vmatprep.subr.bf16.mxu1 %v2942_v41 }
  0x9c   : > { %1534 = vmatmul.mubr.bf16.gmra.mxu0 %v3351_v29 }
  0x9d   : > { %1597 = vmatmul.mubr.bf16.gmra.mxu1 %v3371_v35  ;;  %2543 = vmatpush3.bf16.msra.mxu0 %v2943_v42 }
  0x9e   : > { %2577 = vmatpush3.bf16.msra.mxu1 %v2944_v43  ;;  %2544 = vmatprep.subr.bf16.mxu0 %v2945_v44 }
  0x9f   : > { %2578 = vmatprep.subr.bf16.mxu1 %v2946_v45  ;;  %1639 = vmatprep.mubr.bf16.mxu0 %v3208_v48  ;;  %v2955_v48 = vld [vmem:[%s3806_s1 + $0x10] ss:$20 sps:$4 sm:$0xff]  }
  0xa0   : > { %1696 = vmatprep.mubr.bf16.mxu1 %v3214_v50  ;;  %v2956_v50 = vld [vmem:[%s3806_s1 + $0x290] ss:$20 sps:$4 sm:$0xff]  }
  0xa1   : > { %2545 = vmatpush3.bf16.msra.mxu0 %v2947_v46 }
  0xa2   : > { %2579 = vmatpush3.bf16.msra.mxu1 %v2948_v47  ;;  %2546 = vmatprep.subr.bf16.mxu0 %v2949_v49 }
  0xa3   : > { %2580 = vmatprep.subr.bf16.mxu1 %v2950_v51 }
  0xa5   : > { %2547 = vmatpush3.bf16.msra.mxu0 %v2951_v52 }
  0xa6   : > { %2581 = vmatpush3.bf16.msra.mxu1 %v2952_v53  ;;  %2548 = vmatprep.subr.bf16.mxu0 %v2953_v54 }
  0xa7   : > { %2582 = vmatprep.subr.bf16.mxu1 %v2954_v55 }
  0xa9   : > { %2549 = vmatpush3.bf16.msra.mxu0 %v2955_v48 }
  0xaa   : > { %2583 = vmatpush3.bf16.msra.mxu1 %v2956_v50  ;;  %2602 = vmatprep.subr.bf16.mxu0 %v2957_v56 }
  0xab   : > { %2636 = vmatprep.subr.bf16.mxu1 %v2973_v57 }
  0xac   : > { %1640 = vmatmul.mubr.bf16.vlgmr.msra.gmra.mxu0 %v3270_v4  ;;  %v2961_v4 = vld [vmem:[%s3808_s3 + $0x68] sm:$0xff]  }
  0xad   : > { %1697 = vmatmul.mubr.bf16.vlgmr.msra.gmra.mxu1 %v3273_v5  ;;  %1647 = vmatprep.mubr.bf16.mxu0 %v3305_v15  ;;  %v2977_v5 = vld [vmem:[%s3808_s3 + $0xe8] sm:$0xff]  }
  0xae   : > { %1704 = vmatprep.mubr.bf16.mxu1 %v3324_v21  ;;  %2603 = vmatpush3.bf16.msra.mxu0 %v2958_v58  ;;  %v2962_v15 = vld [vmem:[%s3808_s3 + $0x28] sm:$0xff]  }
  0xaf   : > { %2637 = vmatpush3.bf16.msra.mxu1 %v2974_v59  ;;  %2604 = vmatprep.subr.bf16.mxu0 %v2959_v60  ;;  %v2978_v21 = vld [vmem:[%s3808_s3 + $0xa8] sm:$0xff]   ;;  %v3732_v60 = vld [vmem:[%s3808_s3 + $0x118] sm:$0xff]  }
  0xb0   : > { %2638 = vmatprep.subr.bf16.mxu1 %v2975_v61 }
  0xb2   : > { %2605 = vmatpush3.bf16.msra.mxu0 %v2960_v62 }
  0xb3   : > { %2639 = vmatpush3.bf16.msra.mxu1 %v2976_v63  ;;  %2606 = vmatprep.subr.bf16.mxu0 %v2961_v4 }
  0xb4   : > { %2640 = vmatprep.subr.bf16.mxu1 %v2977_v5  ;;  %1648 = vmatmul.mubr.bf16.gmra.mxu0 %v3311_v17  ;;  %v2965_v17 = vld [vmem:[%s3808_s3 + $0x58] sm:$0xff]  }
  0xb5   : > { %1705 = vmatmul.mubr.bf16.gmra.mxu1 %v3331_v23  ;;  %1655 = vmatprep.mubr.bf16.mxu0 %v3344_v27  ;;  %v2966_v23 = vld [vmem:[%s3808_s3 + $0x18] sm:$0xff]   ;;  %v2967_v27 = vld [vmem:[%s3808_s3 + $0x50] sm:$0xff]  }
  0xb6   : > { %1712 = vmatprep.mubr.bf16.mxu1 %v3364_v33  ;;  %2607 = vmatpush3.bf16.msra.mxu0 %v2962_v15  ;;  %v2968_v33 = vld [vmem:[%s3808_s3 + $0x10] sm:$0xff]  }
  0xb7   : > { %2641 = vmatpush3.bf16.msra.mxu1 %v2978_v21  ;;  %2608 = vmatprep.subr.bf16.mxu0 %v2963_v0 }
  0xb8   : > { %2642 = vmatprep.subr.bf16.mxu1 %v2979_v1 }
  0xba   : > { %2609 = vmatpush3.bf16.msra.mxu0 %v2964_v2  ;;  %v3739_v2 = vld [vmem:[%s3808_s3 + $0x110] sm:$0xff]  }
  0xbb   : > { %2643 = vmatpush3.bf16.msra.mxu1 %v2980_v3  ;;  %2610 = vmatprep.subr.bf16.mxu0 %v2965_v17 }
  0xbc   : > { %1656 = vmatmul.mubr.bf16.gmra.mxu0 %v3351_v29  ;;  %v2971_v29 = vld [vmem:[%s3808_s3 + $0x40] sm:$0xff]   ;;  %2644 = vmatprep.subr.bf16.mxu1 %v2981_v8 }
  0xbd   : > { %1713 = vmatmul.mubr.bf16.gmra.mxu1 %v3371_v35  ;;  %v2972_v35 = vld [vmem:[%s3808_s3] sm:$0xff]  }
  0xbe   : > { %2611 = vmatpush3.bf16.msra.mxu0 %v2966_v23 }
  0xbf   : > { %2612 = vmatprep.subr.bf16.mxu0 %v2967_v27  ;;  %2645 = vmatpush3.bf16.msra.mxu1 %v2982_v9 }
  0xc0   : > { %2646 = vmatprep.subr.bf16.mxu1 %v2983_v10 }
  0xc2   : > { %2613 = vmatpush3.bf16.msra.mxu0 %v2968_v33 }
  0xc3   : > { %2614 = vmatprep.subr.bf16.mxu0 %v2969_v6  ;;  %2647 = vmatpush3.bf16.msra.mxu1 %v2984_v11  ;;  %v3747_v11 = vld [vmem:[%s3808_s3 + $0x108] sm:$0xff]  }
  0xc4   : > { %2648 = vmatprep.subr.bf16.mxu1 %v2985_v12 }
  0xc6   : > { %2615 = vmatpush3.bf16.msra.mxu0 %v2970_v7 }
  0xc7   : > { %2616 = vmatprep.subr.bf16.mxu0 %v2971_v29  ;;  %2649 = vmatpush3.bf16.msra.mxu1 %v2986_v13 }
  0xc8   : > { %2650 = vmatprep.subr.bf16.mxu1 %v2987_v14 }
  0xca   : > { %2617 = vmatpush3.bf16.msra.mxu0 %v2972_v35 }
  0xcb   : > { %2651 = vmatpush3.bf16.msra.mxu1 %v2988_v16  ;;  %2677 = vmatprep.subr.bf16.mxu0 %v3013_v18 }
  0xcc   : > { %2697 = vmatprep.subr.bf16.mxu1 %v3013_v18 }
 0x10c   : > { %v1389_v30 = vpop.f32.mrf.mxu0 }
 0x10d   : > { %v1452_v31 = vpop.f32.mrf.mxu1  ;;  %v1390_v37 = vadd.f32 %v1389_v30, %v441_v28 }
 0x10e   : > { %v1391_v32 = vpop.f32.mrf.mxu0 }
 0x10f   : > { %v1454_v34 = vpop.f32.mrf.mxu1  ;;  %v1392_v36 = vadd.f32 %v1391_v32, %v3723_v26  ;;  %v1453_v45 = vadd.f32 %v1452_v31, %v1390_v37 }
 0x110   : > { %v1393_v38 = vpop.f32.mrf.mxu0 }
 0x111   : > { %v1456_v39 = vpop.f32.mrf.mxu1  ;;  %v1394_v40 = vadd.f32 %v1393_v38, %v441_v28  ;;  %v1455_v42 = vadd.f32 %v1454_v34, %v1392_v36  ;;  %v1721_v50 = vmax.f32 %v1453_v45, 0.0 }
 0x112   : > { %v1395_v41 = vpop.f32.mrf.mxu0 }
 0x113   : > { %v1457_v43 = vadd.f32 %v1456_v39, %v1394_v40  ;;  %v1396_v44 = vadd.f32 %v1395_v41, %v3723_v26  ;;  %v1458_v46 = vpop.f32.mrf.mxu1  ;;  %v1722_v54 = vmax.f32 %v1455_v42, 0.0  ;;  %v452_v41 = vsub.s32 3, %v3713_v20 }
 0x114   : > { %v1399_v47 = vpop.f32.mrf.mxu0  ;;  %v448_v42 = vsub.s32 2, %v3713_v20 }
 0x115   : > { %v1459_v49 = vadd.f32 %v1458_v46, %v1396_v44  ;;  %v1726_v51 = vmax.f32 %v1457_v43, 0.0  ;;  %v1400_v52 = vadd.f32 %v1399_v47, %v441_v28  ;;  %v1462_v56 = vpop.f32.mrf.mxu1  ;;  %v3764_v43 = vrot.slane %v3719_v24, %v452_v41 }
 0x116   : > { %v1401_v53 = vpop.f32.mrf.mxu0  ;;  %v449_v44 = vrot.slane %v3719_v24, %v448_v42 }
 0x117   : > { %v1727_v55 = vmax.f32 %v1459_v49, 0.0  ;;  %v1402_v48 = vadd.f32 %v1401_v53, %v3723_v26  ;;  %v1751_v61 = vpack.c.bf16 %v1726_v51, %v1721_v50  ;;  %v1463_v62 = vadd.f32 %v1462_v56, %v1400_v52  ;;  %v1464_v63 = vpop.f32.mrf.mxu1 }
 0x118   : > { %v1403_v57 = vpop.f32.mrf.mxu0 }
 0x119   : > { %v1752_v58 = vpack.c.bf16 %v1727_v55, %v1722_v54  ;;  %v1404_v59 = vadd.f32 %v1403_v57, %v441_v28  ;;  %v1465_v5 = vadd.f32 %v1464_v63, %v1402_v48  ;;  %v1466_v21 = vpop.f32.mrf.mxu1  ;;  %v1731_v3 = vmax.f32 %v1463_v62, 0.0 }
 0x11a   : > { %v1405_v4 = vpop.f32.mrf.mxu0 }
 0x11b   : > { %2103 = vmatprep.mubr.bf16.mxu0 %v1752_v58  ;;  %v1406_v15 = vadd.f32 %v1405_v4, %v3723_v26  ;;  %v1467_v1 = vadd.f32 %v1466_v21, %v1404_v59  ;;  %v1468_v23 = vpop.f32.mrf.mxu1  ;;  %v1732_v33 = vmax.f32 %v1465_v5, 0.0 }
 0x11c   : > { %2104 = vmatmul.mubr.bf16.vlgmr.msra.gmra.mxu0 %v1751_v61  ;;  %v1409_v0 = vpop.f32.mrf.mxu0 }
 0x11d   : > { %2678 = vmatpush3.bf16.msra.mxu0 %v3732_v60  ;;  %v1410_v17 = vadd.f32 %v1409_v0, %v441_v28  ;;  %v1736_v6 = vmax.f32 %v1467_v1, 0.0  ;;  %v1469_v7 = vadd.f32 %v1468_v23, %v1406_v15 }
 0x11e   : > { %v1411_v27 = vpop.f32.mrf.mxu0  ;;  %2679 = vmatprep.subr.bf16.mxu0 %v3013_v18 }
 0x11f   : > { %v1412_v29 = vadd.f32 %v1411_v27, %v3723_v26  ;;  %v1472_v35 = vpop.f32.mrf.mxu1  ;;  %v1737_v9 = vmax.f32 %v1469_v7, 0.0  ;;  %v1756_v12 = vpack.c.bf16 %v1736_v6, %v1731_v3 }
 0x120   : > { %v1413_v8 = vpop.f32.mrf.mxu0  ;;  %v1473_v13 = vadd.f32 %v1472_v35, %v1410_v17 }
 0x121   : > { %v1414_v10 = vadd.f32 %v1413_v8, %v441_v28  ;;  %2680 = vmatpush3.bf16.msra.mxu0 %v3739_v2  ;;  %v1474_v14 = vpop.f32.mrf.mxu1  ;;  %v1757_v19 = vpack.c.bf16 %v1737_v9, %v1732_v33  ;;  %v3755_v28 = vld [vmem:[%s3808_s3 + $0x100] sm:$0xff]  }
 0x122   : > { %v1415_v16 = vpop.f32.mrf.mxu0  ;;  %2681 = vmatprep.subr.bf16.mxu0 %v3013_v18  ;;  %v1475_v22 = vadd.f32 %v1474_v14, %v1412_v29  ;;  %v1741_v32 = vmax.f32 %v1473_v13, 0.0 }
 0x123   : > { %v1416_v25 = vadd.f32 %v1415_v16, %v3723_v26  ;;  %v1476_v30 = vpop.f32.mrf.mxu1  ;;  %2111 = vmatprep.mubr.bf16.mxu0 %v1757_v19 }
 0x124   : > { %v1477_v31 = vadd.f32 %v1476_v30, %v1414_v10  ;;  %2112 = vmatmul.mubr.bf16.gmra.mxu0 %v1756_v12  ;;  %v1742_v36 = vmax.f32 %v1475_v22, 0.0 }
 0x125   : > { %2682 = vmatpush3.bf16.msra.mxu0 %v3747_v11  ;;  %v1478_v34 = vpop.f32.mrf.mxu1 }
 0x126   : > { %2683 = vmatprep.subr.bf16.mxu0 %v3013_v18  ;;  %v1746_v37 = vmax.f32 %v1477_v31, 0.0  ;;  %v1479_v38 = vadd.f32 %v1478_v34, %v1416_v25 }
 0x128   : > { %v1747_v39 = vmax.f32 %v1479_v38, 0.0  ;;  %v1761_v26 = vpack.c.bf16 %v1746_v37, %v1741_v32 }
 0x129   : > { %2684 = vmatpush3.bf16.msra.mxu0 %v3755_v28 }
 0x12a   : > { %v1762_v40 = vpack.c.bf16 %v1747_v39, %v1742_v36 }
 0x12c   : > { %2119 = vmatprep.mubr.bf16.mxu0 %v1762_v40 }
 0x12d   : > { %2120 = vmatmul.mubr.bf16.gmra.mxu0 %v1761_v26 }
 0x12e   : > { %2685 = vmatprep.mubr.msk.bf16.mxu0 %vm3014_vm0, %v3013_v18 }
 0x14c   : > { %v1515_v45 = vpop.f32.mrf.mxu0 }
 0x14d   : > { %v1578_v46 = vpop.f32.mrf.mxu1  ;;  %v1516_v52 = vadd.f32 %v1515_v45, %v449_v44 }
 0x14e   : > { %v1517_v47 = vpop.f32.mrf.mxu0 }
 0x14f   : > { %v1580_v49 = vpop.f32.mrf.mxu1  ;;  %v1518_v51 = vadd.f32 %v1517_v47, %v3764_v43  ;;  %v1579_v59 = vadd.f32 %v1578_v46, %v1516_v52 }
 0x150   : > { %v1519_v53 = vpop.f32.mrf.mxu0 }
 0x151   : > { %v1582_v54 = vpop.f32.mrf.mxu1  ;;  %v1520_v55 = vadd.f32 %v1519_v53, %v449_v44  ;;  %v1581_v56 = vadd.f32 %v1580_v49, %v1518_v51  ;;  %v1723_v17 = vmax.f32 %v1579_v59, 0.0 }
 0x152   : > { %v1521_v48 = vpop.f32.mrf.mxu0 }
 0x153   : > { %v1584_v50 = vpop.f32.mrf.mxu1  ;;  %v1583_v57 = vadd.f32 %v1582_v54, %v1520_v55  ;;  %v1522_v58 = vadd.f32 %v1521_v48, %v3764_v43  ;;  %v1724_v0 = vmax.f32 %v1581_v56, 0.0  ;;  %v456_v55 = vsub.s32 4, %v3713_v20 }
 0x154   : > { %v1525_v61 = vpop.f32.mrf.mxu0 }
 0x155   : > { %v1588_v62 = vpop.f32.mrf.mxu1  ;;  %v1585_v63 = vadd.f32 %v1584_v50, %v1522_v58  ;;  %v1526_v4 = vadd.f32 %v1525_v61, %v449_v44  ;;  %v1728_v5 = vmax.f32 %v1583_v57, 0.0  ;;  %v457_v50 = vrot.slane %v3719_v24, %v456_v55 }
 0x156   : > { %v1527_v15 = vpop.f32.mrf.mxu0 }
 0x157   : > { %v1590_v21 = vpop.f32.mrf.mxu1  ;;  %v1729_v1 = vmax.f32 %v1585_v63, 0.0  ;;  %v1528_v3 = vadd.f32 %v1527_v15, %v3764_v43  ;;  %v1589_v23 = vadd.f32 %v1588_v62, %v1526_v4  ;;  %v1753_v35 = vpack.c.bf16 %v1728_v5, %v1723_v17 }
 0x158   : > { %v1529_v27 = vpop.f32.mrf.mxu0 }
 0x159   : > { %v1592_v33 = vpop.f32.mrf.mxu1  ;;  %v1754_v6 = vpack.c.bf16 %v1729_v1, %v1724_v0  ;;  %v1530_v7 = vadd.f32 %v1529_v27, %v449_v44  ;;  %v1591_v29 = vadd.f32 %v1590_v21, %v1528_v3  ;;  %v1733_v13 = vmax.f32 %v1589_v23, 0.0 }
 0x15a   : > { %v1531_v8 = vpop.f32.mrf.mxu0 }
 0x15b   : > { %v1594_v9 = vpop.f32.mrf.mxu1  ;;  %v1532_v10 = vadd.f32 %v1531_v8, %v3764_v43  ;;  %v1593_v12 = vadd.f32 %v1592_v33, %v1530_v7  ;;  %2160 = vmatprep.mubr.bf16.mxu1 %v1754_v6  ;;  %v1734_v19 = vmax.f32 %v1591_v29, 0.0 }
 0x15c   : > { %v1535_v14 = vpop.f32.mrf.mxu0  ;;  %2161 = vmatmul.mubr.bf16.vlgmr.msra.gmra.mxu1 %v1753_v35 }
 0x15d   : > { %v1598_v16 = vpop.f32.mrf.mxu1  ;;  %v1738_v22 = vmax.f32 %v1593_v12, 0.0  ;;  %v1536_v25 = vadd.f32 %v1535_v14, %v449_v44  ;;  %v1595_v30 = vadd.f32 %v1594_v9, %v1532_v10  ;;  %2701 = vmatpush3.bf16.msra.mxu1 %v3732_v60 }
 0x15e   : > { %v1537_v31 = vpop.f32.mrf.mxu0  ;;  %2698 = vmatprep.subr.bf16.mxu1 %v3013_v18 }
 0x15f   : > { %v1600_v32 = vpop.f32.mrf.mxu1  ;;  %v1739_v34 = vmax.f32 %v1595_v30, 0.0  ;;  %v1538_v36 = vadd.f32 %v1537_v31, %v3764_v43  ;;  %v1758_v37 = vpack.c.bf16 %v1738_v22, %v1733_v13  ;;  %v1599_v38 = vadd.f32 %v1598_v16, %v1536_v25 }
 0x160   : > { %v1539_v39 = vpop.f32.mrf.mxu0 }
 0x161   : > { %v1602_v26 = vpop.f32.mrf.mxu1  ;;  %v1759_v40 = vpack.c.bf16 %v1739_v34, %v1734_v19  ;;  %v1540_v41 = vadd.f32 %v1539_v39, %v449_v44  ;;  %v1601_v42 = vadd.f32 %v1600_v32, %v1538_v36  ;;  %2702 = vmatpush3.bf16.msra.mxu1 %v3739_v2  ;;  %v1743_v49 = vmax.f32 %v1599_v38, 0.0 }
 0x162   : > { %v1541_v45 = vpop.f32.mrf.mxu0  ;;  %2699 = vmatprep.subr.bf16.mxu1 %v3013_v18 }
 0x163   : > { %v1604_v46 = vpop.f32.mrf.mxu1  ;;  %v1542_v60 = vadd.f32 %v1541_v45, %v3764_v43  ;;  %v1603_v47 = vadd.f32 %v1602_v26, %v1540_v41  ;;  %2168 = vmatprep.mubr.bf16.mxu1 %v1759_v40  ;;  %v1744_v51 = vmax.f32 %v1601_v42, 0.0 }
 0x164   : > { %2169 = vmatmul.mubr.bf16.gmra.mxu1 %v1758_v37 }
 0x165   : > { %v1748_v52 = vmax.f32 %v1603_v47, 0.0  ;;  %v1605_v53 = vadd.f32 %v1604_v46, %v1542_v60  ;;  %2703 = vmatpush3.bf16.msra.mxu1 %v3747_v11 }
 0x166   : > { %2700 = vmatprep.subr.bf16.mxu1 %v3013_v18 }
 0x167   : > { %v1749_v44 = vmax.f32 %v1605_v53, 0.0  ;;  %v1763_v54 = vpack.c.bf16 %v1748_v52, %v1743_v49 }
 0x169   : > { %v1764_v2 = vpack.c.bf16 %v1749_v44, %v1744_v51  ;;  %2704 = vmatpush3.bf16.msra.mxu1 %v3755_v28 }
 0x16b   : > { %2176 = vmatprep.mubr.bf16.mxu1 %v1764_v2 }
 0x16c   : > { %v2550_v43 = vpop.f32.mrf.mxu0  ;;  %2177 = vmatmul.mubr.bf16.gmra.mxu1 %v1763_v54 }
 0x16d   : > { %v2584_v48 = vpop.f32.mrf.mxu1  ;;  %2689 = vmatprep.mubr.msk.bf16.mxu1 %vm3014_vm0, %v3013_v18 }
 0x16e   : > { %v2551_v56 = vpop.f32.mrf.mxu0 }
 0x16f   : > { %v2585_v11 = vpop.f32.mrf.mxu1  ;;  %v2552_v57 = vadd.f32 %v2551_v56, %v2550_v43 }
 0x170   : > { %v2553_v58 = vpop.f32.mrf.mxu0  ;;  %v2586_v20 = vadd.f32 %v2585_v11, %v2584_v48 }
 0x171   : > { %v2587_v59 = vpop.f32.mrf.mxu1  ;;  %v1642_v61 = vadd.f32 %v2552_v57, %v457_v50 }
 0x172   : > { %v2554_v62 = vpop.f32.mrf.mxu0 }
 0x173   : > { %v2588_v63 = vpop.f32.mrf.mxu1  ;;  %v2555_v4 = vadd.f32 %v2554_v62, %v2553_v58  ;;  %v1699_v15 = vadd.f32 %v2586_v20, %v1642_v61 }
 0x174   : > { %v2556_v28 = vpop.f32.mrf.mxu0  ;;  %v2589_v0 = vadd.f32 %v2588_v63, %v2587_v59 }
 0x175   : > { %v2590_v5 = vpop.f32.mrf.mxu1  ;;  %v1645_v21 = vadd.f32 %v2555_v4, %v457_v50  ;;  %v1725_v33 = vmax.f32 %v1699_v15, 0.0 }
 0x176   : > { %v2557_v1 = vpop.f32.mrf.mxu0 }
 0x177   : > { %v2591_v24 = vpop.f32.mrf.mxu1  ;;  %v1702_v3 = vadd.f32 %v2589_v0, %v1645_v21  ;;  %v2558_v17 = vadd.f32 %v2557_v1, %v2556_v28  ;;  %v2491_v28 = vld [vmem:[%s3809_s4] ss:$0 sm:$0xff] }
 0x178   : > { %v2559_v23 = vpop.f32.mrf.mxu0  ;;  %v2592_v9 = vadd.f32 %v2591_v24, %v2590_v5 }
 0x179   : > { %v2593_v27 = vpop.f32.mrf.mxu1  ;;  %v1730_v6 = vmax.f32 %v1702_v3, 0.0  ;;  %v1650_v7 = vadd.f32 %v2558_v17, %v457_v50 }
 0x17a   : > { %v2560_v29 = vpop.f32.mrf.mxu0 }
 0x17b   : > { %v2594_v35 = vpop.f32.mrf.mxu1  ;;  %v1755_v8 = vpack.c.bf16 %v1730_v6, %v1725_v33  ;;  %v2561_v10 = vadd.f32 %v2560_v29, %v2559_v23  ;;  %v1707_v14 = vadd.f32 %v2592_v9, %v1650_v7 }
 0x17c   : > { %v2562_v12 = vpop.f32.mrf.mxu0  ;;  %v2595_v19 = vadd.f32 %v2594_v35, %v2593_v27 }
 0x17d   : > { %v2596_v13 = vpop.f32.mrf.mxu1  ;;  %v1653_v16 = vadd.f32 %v2561_v10, %v457_v50  ;;  %2686 = vmatmul.mubr.msk.bf16.vlgmr.msra.gmra.mxu0 %vm2061_vm1, %v1755_v8  ;;  %v1735_v36 = vmax.f32 %v1707_v14, 0.0 }
 0x17e   : > { %v2563_v22 = vpop.f32.mrf.mxu0 }
 0x17f   : > { %v2597_v25 = vpop.f32.mrf.mxu1  ;;  %v1710_v30 = vadd.f32 %v2595_v19, %v1653_v16  ;;  %v2564_v31 = vadd.f32 %v2563_v22, %v2562_v12 }
 0x180   : > { %v2565_v32 = vpop.f32.mrf.mxu0  ;;  %v2598_v41 = vadd.f32 %v2597_v25, %v2596_v13 }
 0x181   : > { %v2599_v34 = vpop.f32.mrf.mxu1  ;;  %v1740_v37 = vmax.f32 %v1710_v30, 0.0  ;;  %v1658_v38 = vadd.f32 %v2564_v31, %v457_v50 }
 0x182   : > { %v2566_v39 = vpop.f32.mrf.mxu0 }
 0x183   : > { %v2600_v26 = vpop.f32.mrf.mxu1  ;;  %v1760_v40 = vpack.c.bf16 %v1740_v37, %v1735_v36  ;;  %v2567_v42 = vadd.f32 %v2566_v39, %v2565_v32  ;;  %v1715_v45 = vadd.f32 %v2598_v41, %v1658_v38 }
 0x184   : > { %v2601_v60 = vadd.f32 %v2600_v26, %v2599_v34 }
 0x185   : > { %v1661_v46 = vadd.f32 %v2567_v42, %v457_v50  ;;  %2690 = vmatmul.mubr.msk.bf16.vlgmr.msra.gmra.mxu1 %vm2061_vm1, %v1760_v40  ;;  %v1745_v49 = vmax.f32 %v1715_v45, 0.0 }
 0x186   : > { %2693 = vmatprep.mubr.msk.bf16.mxu1 %vm3014_vm0, %v3013_v18 }
 0x187   : > { %v1718_v47 = vadd.f32 %v2601_v60, %v1661_v46 }
 0x189   : > { %v1750_v51 = vmax.f32 %v1718_v47, 0.0 }
 0x18b   : > { %v1765_v52 = vpack.c.bf16 %v1750_v51, %v1745_v49 }
 0x18d   : > { %2694 = vmatmul.mubr.msk.bf16.gmra.mxu1 %vm2061_vm1, %v1765_v52 }
 0x1dc   : > { %v2618_v53 = vpop.f32.mrf.mxu0 }
 0x1de   : > { %v2619_v44 = vpop.f32.mrf.mxu0 }
 0x1df   : > { %v2620_v4 = vadd.f32 %v2619_v44, %v2618_v53 }
 0x1e0   : > { %v2621_v54 = vpop.f32.mrf.mxu0 }
 0x1e1   : > { %v2106_v0 = vadd.f32 %v2620_v4, %v2491_v28 }
 0x1e2   : > { %v2622_v55 = vpop.f32.mrf.mxu0 }
 0x1e3   : > { %v2623_v1 = vadd.f32 %v2622_v55, %v2621_v54 }
 0x1e4   : > { %v2624_v48 = vpop.f32.mrf.mxu0 }
 0x1e5   : > { %v2109_v33 = vadd.f32 %v2623_v1, %v2491_v28 }
 0x1e6   : > { %v2625_v56 = vpop.f32.mrf.mxu0 }
 0x1e7   : > { %v2626_v6 = vadd.f32 %v2625_v56, %v2624_v48 }
 0x1e8   : > { %v2627_v57 = vpop.f32.mrf.mxu0 }
 0x1e9   : > { %v2114_v12 = vadd.f32 %v2626_v6, %v2491_v28 }
 0x1ea   : > { %v2628_v59 = vpop.f32.mrf.mxu0 }
 0x1eb   : > { %v2629_v13 = vadd.f32 %v2628_v59, %v2627_v57 }
 0x1ed   : > { %v2630_v61 = vpop.f32.mrf.mxu0  ;;  %v2117_v31 = vadd.f32 %v2629_v13, %v2491_v28 }
 0x1ef   : > { %v2631_v63 = vpop.f32.mrf.mxu0 }
 0x1f0   : > { %v2632_v32 = vadd.f32 %v2631_v63, %v2630_v61 }
 0x1f1   : > { %v2633_v5 = vpop.f32.mrf.mxu0 }
 0x1f2   : > { %v2122_v26 = vadd.f32 %v2632_v32, %v2491_v28 }
 0x1f3   : > { %v2634_v24 = vpop.f32.mrf.mxu0 }
 0x1f4   : > { %v2635_v40 = vadd.f32 %v2634_v24, %v2633_v5 }
 0x1f6   : > { %v2125_v49 = vadd.f32 %v2635_v40, %v2491_v28 }
 0x21c   : > { %v2652_v2 = vpop.f32.mrf.mxu1 }
 0x21e   : > { %v2653_v43 = vpop.f32.mrf.mxu1 }
 0x21f   : > { %v2654_v21 = vadd.f32 %v2653_v43, %v2652_v2 }
 0x220   : > { %v2655_v50 = vpop.f32.mrf.mxu1 }
 0x221   : > { %v2163_v23 = vadd.f32 %v2654_v21, %v2106_v0 }
 0x222   : > { %v2656_v11 = vpop.f32.mrf.mxu1 }
 0x223   : > { %v2657_v17 = vadd.f32 %v2656_v11, %v2655_v50 }
 0x224   : > { %v2658_v58 = vpop.f32.mrf.mxu1 }
 0x225   : > { %v2166_v9 = vadd.f32 %v2657_v17, %v2109_v33 }
 0x226   : > { %v2659_v18 = vpop.f32.mrf.mxu1 }
 0x227   : > { %v2660_v8 = vadd.f32 %v2659_v18, %v2658_v58 }
 0x228   : > { %v2661_v62 = vpop.f32.mrf.mxu1 }
 0x229   : > { %v2171_v25 = vadd.f32 %v2660_v8, %v2114_v12 }
 0x22a   : > { %v2662_v20 = vpop.f32.mrf.mxu1 }
 0x22b   : > { %v2663_v22 = vadd.f32 %v2662_v20, %v2661_v62 }
 0x22c   : > { %v2664_v15 = vpop.f32.mrf.mxu1 }
 0x22d   : > { %v2174_v38 = vadd.f32 %v2663_v22, %v2117_v31 }
 0x22e   : > { %v2665_v3 = vpop.f32.mrf.mxu1 }
 0x22f   : > { %v2666_v37 = vadd.f32 %v2665_v3, %v2664_v15 }
 0x230   : > { %v2667_v29 = vpop.f32.mrf.mxu1 }
 0x231   : > { %v2179_v46 = vadd.f32 %v2666_v37, %v2122_v26 }
 0x232   : > { %v2668_v16 = vpop.f32.mrf.mxu1 }
 0x233   : > { %v2669_v45 = vadd.f32 %v2668_v16, %v2667_v29 }
 0x235   : > { %v2182_v53 = vadd.f32 %v2669_v45, %v2125_v49 }
 0x23d   : > { %v2219_v27 = vpop.f32.mrf.mxu0 }
 0x23e   : > { %v2220_v7 = vadd.f32 %v2219_v27, %v2163_v23 }
 0x23f   : > { %v2687_v35 = vpop.f32.mrf.mxu0 }
 0x240   : > { %2993 = vtanh.f32 %v2220_v7 }
 0x241   : > { %v2222_v10 = vpop.f32.mrf.mxu0 }
 0x242   : > { %v2223_v14 = vadd.f32 %v2222_v10, %v2166_v9 }
 0x243   : > { %v2688_v19 = vpop.f32.mrf.mxu0 }
 0x244   : > { %2995 = vtanh.f32 %v2223_v14 }
 0x245   : > { %v2227_v30 = vpop.f32.mrf.mxu1 }
 0x246   : > { %v2228_v34 = vadd.f32 %v2227_v30, %v2171_v25 }
 0x247   : > { %v2691_v36 = vpop.f32.mrf.mxu1 }
 0x248   : > { %2997 = vtanh.f32 %v2228_v34 }
 0x249   : > { %v2230_v39 = vpop.f32.mrf.mxu1 }
 0x24a   : > { %v2231_v41 = vadd.f32 %v2230_v39, %v2174_v38 }
 0x24b   : > { %v2692_v42 = vpop.f32.mrf.mxu1 }
 0x24c   : > { %2999 = vtanh.f32 %v2231_v41 }
 0x24d   : > { %v2994_v60 = vpop.eup %2993  ;;  %v2235_v47 = vpop.f32.mrf.mxu1 }
 0x24e   : > { %2249 = vst.msk [vmem:[%s229_s11] sm:$0xff] %vm2248_vm2, %v2994_v60  ;;  %v2236_v51 = vadd.f32 %v2235_v47, %v2179_v46 }
 0x24f   : > { %v2695_v52 = vpop.f32.mrf.mxu1 }
 0x250   : > { %3001 = vtanh.f32 %v2236_v51 }
 0x251   : > { %v2996_v44 = vpop.eup %2995  ;;  %v2238_v54 = vpop.f32.mrf.mxu1 }
 0x252   : > { %2250 = vst.msk [vmem:[%s229_s11 + $0x8] sm:$0xff] %vm2248_vm2, %v2996_v44  ;;  %v2239_v2 = vadd.f32 %v2238_v54, %v2182_v53 }
 0x253   : > { %v2696_v55 = vpop.f32.mrf.mxu1 }
 0x254   : > { %3003 = vtanh.f32 %v2239_v2 }
 0x255   : > { %v2998_v43 = vpop.eup %2997 }
 0x256   : > { %2251 = vst.msk [vmem:[%s229_s11 + $0x10] sm:$0xff] %vm2248_vm2, %v2998_v43 }
 0x259   : > { %v3000_v48 = vpop.eup %2999 }
 0x25a   : > { %2252 = vst.msk [vmem:[%s229_s11 + $0x18] sm:$0xff] %vm2248_vm2, %v3000_v48 }
 0x25d   : > { %v3002_v50 = vpop.eup %3001 }
 0x25e   : > { %2253 = vst.msk [vmem:[%s229_s11 + $0x20] sm:$0xff] %vm2248_vm2, %v3002_v50 }
 0x261   : > { %v3004_v56 = vpop.eup %3003 }
 0x262   : > { %2254 = vst.msk [vmem:[%s229_s11 + $0x28] sm:$0xff] %vm2248_vm2, %v3004_v56 }
 0x263 PF: > { %s15_s18 = sadd.s32 1, %s3011_s18  }
 0x264   : > { %p12_p4 = scmp.ge.s32.totalorder %s15_s18, 4  }
 0x266   :  { %14 = sbr.rel (!%p12_p4) target bundleno = 1 (0x1), region = 70 }

</bundles_post_ra>
